<compile_context>
chip_gen: v7x
topology: tpu7x:2x2x1
jax: 0.10.0
libtpu: 0.0.40
codegen_flags: <defaults>
</compile_context>

<pallas_src>
import functools

import jax
import jax.numpy as jnp
from jax.experimental import pallas as pl
from jax.experimental.pallas import tpu as pltpu


def _llama_mlp_kernel(x_ref, wg_ref, wu_ref, o_ref):
    """Grid = (M//tm, I//tn). Full hidden dim is resident, so each grid step
    does two complete MXU matmuls plus the SiLU*Mul epilogue."""
    xb = x_ref[...]
    g = jnp.dot(xb, wg_ref[...], preferred_element_type=jnp.float32)
    u = jnp.dot(xb, wu_ref[...], preferred_element_type=jnp.float32)
    # SiLU (EUP sigmoid) and the elementwise product stay in f32.
    o_ref[...] = (g * jax.nn.sigmoid(g) * u).astype(o_ref.dtype)


def _round_up(v, m):
    return (v + m - 1) // m * m


def _pick_tile_n(total, pref):
    """Largest multiple of 128 <= pref that evenly divides `total`
    (falls back to the full dim when `total` is small / awkward)."""
    if total <= pref:
        return total
    t = (pref // 128) * 128
    while t > 128 and total % t != 0:
        t -= 128
    if total % t != 0:
        return total
    return t


@functools.partial(jax.jit, static_argnames=("tm", "tn", "compute_dtype"))
def llama_mlp_gate_up(x, w_gate_t, w_up_t, *, tm=256, tn=512,
                      compute_dtype=jnp.bfloat16):
    """x: [B, S, H]; w_gate_t, w_up_t: [H, I] (transposed nn.Linear weights)."""
    B, S, H = x.shape
    I = w_gate_t.shape[1]
    M = B * S
    out_dtype = x.dtype

    # bf16 matmul inputs (halves weight HBM traffic; MXU-native on all gens).
    x2d = x.reshape(M, H).astype(compute_dtype)
    wg = w_gate_t.astype(compute_dtype)
    wu = w_up_t.astype(compute_dtype)

    # ---- tile selection -----------------------------------------------------
    pack = 16 if jnp.dtype(compute_dtype).itemsize == 2 else 8
    tm_eff = min(tm, _round_up(M, pack))          # sublane-pack aligned row tile
    M_pad = _round_up(M, tm_eff)
    if M_pad != M:                                # decode-shaped inputs (M < tm)
        x2d = jnp.pad(x2d, ((0, M_pad - M), (0, 0)))
    tn_eff = _pick_tile_n(I, tn)                  # lane-dense output tile

    grid = (M_pad // tm_eff, I // tn_eff)

    # Double-buffered VMEM footprint (2x each input, 2x output) + headroom.
    cb = jnp.dtype(compute_dtype).itemsize
    ob = jnp.dtype(out_dtype).itemsize
    footprint = 2 * (tm_eff * H * cb + 2 * H * tn_eff * cb + tm_eff * tn_eff * ob)
    vmem_limit = int(min(max(footprint + (4 << 20), 32 << 20), 96 << 20))
    # TODO(synk): for very large H (>~8K) on v7x (64 MiB VMEM) a split-K
    # (tk < H) fallback with a VMEM accumulator would be needed; collapsed-K
    # is the right choice for standard Llama hidden sizes.

    out2d = pl.pallas_call(
        _llama_mlp_kernel,
        out_shape=jax.ShapeDtypeStruct((M_pad, I), out_dtype),
        grid_spec=pltpu.PrefetchScalarGridSpec(
            num_scalar_prefetch=0,
            grid=grid,
            in_specs=[
                # x row block: block index constant across j -> no re-DMA.
                pl.BlockSpec((tm_eff, H), lambda i, j: (i, 0)),
                pl.BlockSpec((H, tn_eff), lambda i, j: (0, j)),  # W_gate^T
                pl.BlockSpec((H, tn_eff), lambda i, j: (0, j)),  # W_up^T
            ],
            out_specs=pl.BlockSpec((tm_eff, tn_eff), lambda i, j: (i, j)),
        ),
        compiler_params=pltpu.CompilerParams(
            dimension_semantics=("parallel", "parallel"),
            vmem_limit_bytes=vmem_limit,
        ),
    )(x2d, wg, wu)

    if M_pad != M:
        out2d = out2d[:M]
    return out2d.reshape(B, S, I)


def _reference(x, w_gate_t, w_up_t, compute_dtype=jnp.bfloat16):
    """Matches the kernel's numerics: bf16 matmul inputs, f32 accumulation,
    f32 SiLU*Mul epilogue."""
    xc = x.astype(compute_dtype)
    g = jnp.einsum("bsh,hi->bsi", xc, w_gate_t.astype(compute_dtype),
                   preferred_element_type=jnp.float32)
    u = jnp.einsum("bsh,hi->bsi", xc, w_up_t.astype(compute_dtype),
                   preferred_element_type=jnp.float32)
    return (g * jax.nn.sigmoid(g) * u).astype(x.dtype)


if __name__ == "__main__":
    # Small config: batch=2, seq=64, hidden=256, intermediate=512
    B, S, H, I = 2, 64, 256, 512

    key = jax.random.PRNGKey(0)
    kx, kg, ku, kd = jax.random.split(key, 4)

    x = jax.random.normal(kx, (B, S, H), dtype=jnp.float32)
    # nn.Linear(H, I, bias=False) weight has shape (I, H); store transposed (H, I).
    w_gate_t = (jax.random.normal(kg, (I, H), dtype=jnp.float32) * 0.02).T
    w_up_t = (jax.random.normal(ku, (I, H), dtype=jnp.float32) * 0.02).T
    # down_proj parameters exist in __init__ but are unused in this forward.
    w_down = jax.random.normal(kd, (H, I), dtype=jnp.float32) * 0.02  # noqa: F841

    # Prefill-shaped call.
    out = llama_mlp_gate_up(x, w_gate_t, w_up_t)
    out = jax.block_until_ready(out)
    ref = _reference(x, w_gate_t, w_up_t)
    assert out.shape == (B, S, I)
    assert jnp.allclose(out, ref, atol=1e-3, rtol=1e-2), float(
        jnp.max(jnp.abs(out - ref)))

    # Decode-shaped call (M < tile, exercises the padding path).
    xd = jax.random.normal(kx, (2, 3, H), dtype=jnp.float32)
    outd = jax.block_until_ready(llama_mlp_gate_up(xd, w_gate_t, w_up_t))
    refd = _reference(xd, w_gate_t, w_up_t)
    assert outd.shape == (2, 3, I)
    assert jnp.allclose(outd, refd, atol=1e-3, rtol=1e-2), float(
        jnp.max(jnp.abs(outd - refd)))

    print("KERNEL_OK")
</pallas_src>

<mosaic_0001>
module attributes {stable_mosaic.version = 11 : i64} {
  func.func @_llama_mlp_kernel(%arg0: i32, %arg1: i32, %arg2: memref<128x256xbf16, #tpu.memory_space<vmem>>, %arg3: memref<256x512xbf16, #tpu.memory_space<vmem>>, %arg4: memref<256x512xbf16, #tpu.memory_space<vmem>>, %arg5: memref<128x512xf32, #tpu.memory_space<vmem>>) attributes {dimension_semantics = [#tpu.dimension_semantics<parallel>, #tpu.dimension_semantics<parallel>], iteration_bounds = array<i64: 1, 1>, scalar_prefetch = 0 : i64, scratch_operands = 0 : i64, tpu.core_type = #tpu.core_type<tc>, window_params = [{transform_indices = @transform_0, window_bounds = array<i64: 128, 256>}, {transform_indices = @transform_1, window_bounds = array<i64: 256, 512>}, {transform_indices = @transform_2, window_bounds = array<i64: 256, 512>}, {transform_indices = @transform_3, window_bounds = array<i64: 128, 512>}]} {
    %c0 = arith.constant 0 : index
    %c0_0 = arith.constant 0 : index
    %0 = vector.load %arg2[%c0, %c0_0] : memref<128x256xbf16, #tpu.memory_space<vmem>>, vector<128x256xbf16>
    %c0_1 = arith.constant 0 : index
    %c0_2 = arith.constant 0 : index
    %1 = vector.load %arg3[%c0_1, %c0_2] : memref<256x512xbf16, #tpu.memory_space<vmem>>, vector<256x512xbf16>
    %cst = arith.constant dense<0.000000e+00> : vector<128x512xf32>
    %2 = tpu.matmul %0, %1, %cst {dimension_numbers = #tpu.dot_dimension_numbers<[1], [0], [0], [1], [0, 0, 1, 1], [], []>} : vector<128x256xbf16>, vector<256x512xbf16>, vector<128x512xf32> -> vector<128x512xf32>
    %c0_3 = arith.constant 0 : index
    %c0_4 = arith.constant 0 : index
    %3 = vector.load %arg4[%c0_3, %c0_4] : memref<256x512xbf16, #tpu.memory_space<vmem>>, vector<256x512xbf16>
    %cst_5 = arith.constant dense<0.000000e+00> : vector<128x512xf32>
    %4 = tpu.matmul %0, %3, %cst_5 {dimension_numbers = #tpu.dot_dimension_numbers<[1], [0], [0], [1], [0, 0, 1, 1], [], []>} : vector<128x256xbf16>, vector<256x512xbf16>, vector<128x512xf32> -> vector<128x512xf32>
    %5 = arith.negf %2 : vector<128x512xf32>
    %6 = math.exp %5 : vector<128x512xf32>
    %cst_6 = arith.constant 1.000000e+00 : f32
    %7 = vector.broadcast %cst_6 : f32 to vector<128x512xf32>
    %8 = arith.addf %7, %6 : vector<128x512xf32>
    %9 = arith.divf %7, %8 : vector<128x512xf32>
    %10 = arith.mulf %2, %9 : vector<128x512xf32>
    %11 = arith.mulf %10, %4 : vector<128x512xf32>
    %c0_7 = arith.constant 0 : index
    %c0_8 = arith.constant 0 : index
    %12 = vector.load %arg5[%c0_7, %c0_8] : memref<128x512xf32, #tpu.memory_space<vmem>>, vector<128x512xf32>
    tpu.vector_store %arg5[%c0_7, %c0_8], %11 {strides = array<i32>} : memref<128x512xf32, #tpu.memory_space<vmem>>, vector<128x512xf32>,
    return
  }
  func.func @transform_0(%arg0: i32, %arg1: i32) -> (i32, i32) {
    %c0_i32 = arith.constant 0 : i32
    %c0_i32_0 = arith.constant 0 : i32
    return %arg0, %c0_i32 : i32, i32
  }
  func.func @transform_1(%arg0: i32, %arg1: i32) -> (i32, i32) {
    %c0_i32 = arith.constant 0 : i32
    %c0_i32_0 = arith.constant 0 : i32
    return %c0_i32, %arg1 : i32, i32
  }
  func.func @transform_2(%arg0: i32, %arg1: i32) -> (i32, i32) {
    %c0_i32 = arith.constant 0 : i32
    %c0_i32_0 = arith.constant 0 : i32
    return %c0_i32, %arg1 : i32, i32
  }
  func.func @transform_3(%arg0: i32, %arg1: i32) -> (i32, i32) {
    %c0_i32 = arith.constant 0 : i32
    return %arg0, %arg1 : i32, i32
  }
}

</mosaic_0001>

<bundles_post_ra>
// kernel: llama_mlp_gate_up.1
= control target key start
LH: loop header
LB: loop body
LE: loop exit
PB: predicated region body
PF: predicated region fallthrough
CT: control target
= control target key end

     0   :  { %s3554_s0 = inlined_call_operand.vmem [shape: bf16[128,256], index: 0, kind: input, shape index: {}]   ;;  %s3555_s1 = inlined_call_operand.vmem [shape: bf16[256,512], index: 1, kind: input, shape index: {}]   ;;  %s3556_s2 = inlined_call_operand.vmem [shape: bf16[256,512], index: 2, kind: input, shape index: {}]   ;;  %s3557_s3 = inlined_call_operand.hbm [shape: f32[128,512], index: 3, kind: output, shape index: {}]  }
   0x1   :  { %v2134_v0 = vld [vmem:[%s3555_s1 + $0x4] ss:$16 sps:$4 sm:$0xff]   ;;  %v2136_v1 = vld [vmem:[%s3555_s1 + $0xc] ss:$16 sps:$4 sm:$0xff]   ;;  %v2138_v2 = vld [vmem:[%s3555_s1] ss:$16 sps:$4 sm:$0xff]  }
   0x2   :  { %495 = vmatprep.subr.bf16.mxu0 %v2134_v0  ;;  %v2139_v3 = vld [vmem:[%s3555_s1 + $0x8] ss:$16 sps:$4 sm:$0xff]   ;;  %608 = vmatprep.subr.bf16.mxu1 %v2136_v1  ;;  %v2140_v4 = vld [vmem:[%s3555_s1 + $0x24] ss:$16 sps:$4 sm:$0xff]   ;;  %v2142_v5 = vld [vmem:[%s3555_s1 + $0x2c] ss:$16 sps:$4 sm:$0xff]  }
   0x3   :  { %496 = vmatpush1.bf16.msra.mxu0 %v2138_v2  ;;  %609 = vmatpush1.bf16.msra.mxu1 %v2139_v3  ;;  %v2144_v6 = vld [vmem:[%s3555_s1 + $0x20] ss:$16 sps:$4 sm:$0xff]   ;;  %v2145_v7 = vld [vmem:[%s3555_s1 + $0x28] ss:$16 sps:$4 sm:$0xff]   ;;  %v2146_v8 = vld [vmem:[%s3555_s1 + $0x44] ss:$16 sps:$4 sm:$0xff]  }
   0x4   :  { %497 = vmatprep.subr.bf16.mxu0 %v2140_v4  ;;  %610 = vmatprep.subr.bf16.mxu1 %v2142_v5  ;;  %v2148_v9 = vld [vmem:[%s3555_s1 + $0x4c] ss:$16 sps:$4 sm:$0xff]   ;;  %v2150_v10 = vld [vmem:[%s3555_s1 + $0x40] ss:$16 sps:$4 sm:$0xff]   ;;  %v2151_v11 = vld [vmem:[%s3555_s1 + $0x48] ss:$16 sps:$4 sm:$0xff]  }
   0x5   :  { %v2152_v12 = vld [vmem:[%s3555_s1 + $0x64] ss:$16 sps:$4 sm:$0xff]   ;;  %v2154_v13 = vld [vmem:[%s3555_s1 + $0x6c] ss:$16 sps:$4 sm:$0xff]   ;;  %v2156_v14 = vld [vmem:[%s3555_s1 + $0x60] ss:$16 sps:$4 sm:$0xff]  }
   0x6   :  { %v2157_v15 = vld [vmem:[%s3555_s1 + $0x68] ss:$16 sps:$4 sm:$0xff]   ;;  %v2158_v16 = vld [vmem:[%s3555_s1 + $0x84] ss:$16 sps:$4 sm:$0xff]   ;;  %v2160_v17 = vld [vmem:[%s3555_s1 + $0x8c] ss:$16 sps:$4 sm:$0xff]  }
   0x7   :  { %498 = vmatpush1.bf16.msra.mxu0 %v2144_v6  ;;  %611 = vmatpush1.bf16.msra.mxu1 %v2145_v7  ;;  %v2162_v18 = vld [vmem:[%s3555_s1 + $0x80] ss:$16 sps:$4 sm:$0xff]   ;;  %v2163_v19 = vld [vmem:[%s3555_s1 + $0x88] ss:$16 sps:$4 sm:$0xff]   ;;  %v2164_v20 = vld [vmem:[%s3555_s1 + $0xa4] ss:$16 sps:$4 sm:$0xff]  }
   0x8   :  { %499 = vmatprep.subr.bf16.mxu0 %v2146_v8  ;;  %612 = vmatprep.subr.bf16.mxu1 %v2148_v9  ;;  %v2166_v21 = vld [vmem:[%s3555_s1 + $0xac] ss:$16 sps:$4 sm:$0xff]   ;;  %v2168_v22 = vld [vmem:[%s3555_s1 + $0xa0] ss:$16 sps:$4 sm:$0xff]   ;;  %v2169_v23 = vld [vmem:[%s3555_s1 + $0xa8] ss:$16 sps:$4 sm:$0xff]  }
   0x9   :  { %v2170_v24 = vld [vmem:[%s3555_s1 + $0xc4] ss:$16 sps:$4 sm:$0xff]   ;;  %v2172_v25 = vld [vmem:[%s3555_s1 + $0xcc] ss:$16 sps:$4 sm:$0xff]   ;;  %v2174_v26 = vld [vmem:[%s3555_s1 + $0xc0] ss:$16 sps:$4 sm:$0xff]  }
   0xa   :  { %v2175_v27 = vld [vmem:[%s3555_s1 + $0xc8] ss:$16 sps:$4 sm:$0xff]   ;;  %v2176_v28 = vld [vmem:[%s3555_s1 + $0xe4] ss:$16 sps:$4 sm:$0xff]   ;;  %v2178_v29 = vld [vmem:[%s3555_s1 + $0xec] ss:$16 sps:$4 sm:$0xff]  }
   0xb   :  { %500 = vmatpush1.bf16.msra.mxu0 %v2150_v10  ;;  %613 = vmatpush1.bf16.msra.mxu1 %v2151_v11  ;;  %v2180_v30 = vld [vmem:[%s3555_s1 + $0xe0] ss:$16 sps:$4 sm:$0xff]   ;;  %v2181_v31 = vld [vmem:[%s3555_s1 + $0xe8] ss:$16 sps:$4 sm:$0xff]   ;;  %v2182_v32 = vld [vmem:[%s3555_s1 + $0x104] ss:$16 sps:$4 sm:$0xff]  }
   0xc   :  { %501 = vmatprep.subr.bf16.mxu0 %v2152_v12  ;;  %614 = vmatprep.subr.bf16.mxu1 %v2154_v13  ;;  %v2184_v33 = vld [vmem:[%s3555_s1 + $0x10c] ss:$16 sps:$4 sm:$0xff]   ;;  %v2186_v34 = vld [vmem:[%s3555_s1 + $0x100] ss:$16 sps:$4 sm:$0xff]   ;;  %v2187_v35 = vld [vmem:[%s3555_s1 + $0x108] ss:$16 sps:$4 sm:$0xff]  }
   0xd   :  { %v2188_v36 = vld [vmem:[%s3555_s1 + $0x124] ss:$16 sps:$4 sm:$0xff]   ;;  %v2190_v37 = vld [vmem:[%s3555_s1 + $0x12c] ss:$16 sps:$4 sm:$0xff]   ;;  %v2192_v38 = vld [vmem:[%s3555_s1 + $0x120] ss:$16 sps:$4 sm:$0xff]  }
   0xe   :  { %v2193_v39 = vld [vmem:[%s3555_s1 + $0x128] ss:$16 sps:$4 sm:$0xff]   ;;  %v2194_v40 = vld [vmem:[%s3555_s1 + $0x144] ss:$16 sps:$4 sm:$0xff]   ;;  %v2196_v41 = vld [vmem:[%s3555_s1 + $0x14c] ss:$16 sps:$4 sm:$0xff]  }
   0xf   :  { %502 = vmatpush1.bf16.msra.mxu0 %v2156_v14  ;;  %615 = vmatpush1.bf16.msra.mxu1 %v2157_v15  ;;  %v2198_v42 = vld [vmem:[%s3555_s1 + $0x140] ss:$16 sps:$4 sm:$0xff]   ;;  %v2199_v43 = vld [vmem:[%s3555_s1 + $0x148] ss:$16 sps:$4 sm:$0xff]   ;;  %v2200_v44 = vld [vmem:[%s3555_s1 + $0x164] ss:$16 sps:$4 sm:$0xff]  }
  0x10   :  { %503 = vmatprep.subr.bf16.mxu0 %v2158_v16  ;;  %616 = vmatprep.subr.bf16.mxu1 %v2160_v17  ;;  %v2202_v45 = vld [vmem:[%s3555_s1 + $0x16c] ss:$16 sps:$4 sm:$0xff]   ;;  %v2204_v46 = vld [vmem:[%s3555_s1 + $0x160] ss:$16 sps:$4 sm:$0xff]   ;;  %v2205_v47 = vld [vmem:[%s3555_s1 + $0x168] ss:$16 sps:$4 sm:$0xff]  }
  0x11   :  { %v2800_v48 = vld [vmem:[%s3554_s0 + $0x4] ss:$8 sps:$4 sm:$0xff]   ;;  %v2210_v51 = vld [vmem:[%s3555_s1 + $0x180] ss:$16 sps:$4 sm:$0xff]   ;;  %v2211_v52 = vld [vmem:[%s3555_s1 + $0x188] ss:$16 sps:$4 sm:$0xff]  }
  0x12   :  { %v2206_v49 = vld [vmem:[%s3555_s1 + $0x184] ss:$16 sps:$4 sm:$0xff]   ;;  %v2208_v50 = vld [vmem:[%s3555_s1 + $0x18c] ss:$16 sps:$4 sm:$0xff]   ;;  %527 = vmatprep.mubr.bf16.mxu0 %v2800_v48  ;;  %640 = vmatprep.mubr.bf16.mxu1 %v2800_v48  ;;  %v2216_v55 = vld [vmem:[%s3555_s1 + $0x1a0] ss:$16 sps:$4 sm:$0xff]  }
  0x13   :  { %504 = vmatpush1.bf16.msra.mxu0 %v2162_v18  ;;  %617 = vmatpush1.bf16.msra.mxu1 %v2163_v19  ;;  %v2212_v53 = vld [vmem:[%s3555_s1 + $0x1a4] ss:$16 sps:$4 sm:$0xff]   ;;  %v2214_v54 = vld [vmem:[%s3555_s1 + $0x1ac] ss:$16 sps:$4 sm:$0xff]   ;;  %v2217_v56 = vld [vmem:[%s3555_s1 + $0x1a8] ss:$16 sps:$4 sm:$0xff]  }
  0x14   :  { %505 = vmatprep.subr.bf16.mxu0 %v2164_v20  ;;  %618 = vmatprep.subr.bf16.mxu1 %v2166_v21  ;;  %v2218_v57 = vld [vmem:[%s3555_s1 + $0x1c4] ss:$16 sps:$4 sm:$0xff]   ;;  %v2220_v58 = vld [vmem:[%s3555_s1 + $0x1cc] ss:$16 sps:$4 sm:$0xff]   ;;  %v2222_v59 = vld [vmem:[%s3555_s1 + $0x1c0] ss:$16 sps:$4 sm:$0xff]  }
  0x15   :  { %v2223_v60 = vld [vmem:[%s3555_s1 + $0x1c8] ss:$16 sps:$4 sm:$0xff]   ;;  %v2224_v61 = vld [vmem:[%s3555_s1 + $0x1e4] ss:$16 sps:$4 sm:$0xff]   ;;  %v2226_v62 = vld [vmem:[%s3555_s1 + $0x1ec] ss:$16 sps:$4 sm:$0xff]  }
  0x16   :  { %v2228_v63 = vld [vmem:[%s3555_s1 + $0x1e0] ss:$16 sps:$4 sm:$0xff]   ;;  %v2229_v0 = vld [vmem:[%s3555_s1 + $0x1e8] ss:$16 sps:$4 sm:$0xff]   ;;  %v2235_v1 = vld [vmem:[%s3556_s2 + $0x4] ss:$16 sps:$4 sm:$0xff]  }
  0x17   :  { %506 = vmatpush1.bf16.msra.mxu0 %v2168_v22  ;;  %619 = vmatpush1.bf16.msra.mxu1 %v2169_v23  ;;  %v2238_v2 = vld [vmem:[%s3556_s2 + $0xc] ss:$16 sps:$4 sm:$0xff]   ;;  %v2861_v3 = vld [vmem:[%s3554_s0] ss:$8 sps:$4 sm:$0xff]   ;;  %v2241_v6 = vld [vmem:[%s3556_s2 + $0x24] ss:$16 sps:$4 sm:$0xff]  }
  0x18   :  { %507 = vmatprep.subr.bf16.mxu0 %v2170_v24  ;;  %620 = vmatprep.subr.bf16.mxu1 %v2172_v25  ;;  %v2233_v4 = vld [vmem:[%s3556_s2] ss:$16 sps:$4 sm:$0xff]   ;;  %v2236_v5 = vld [vmem:[%s3556_s2 + $0x8] ss:$16 sps:$4 sm:$0xff]   ;;  %v2244_v7 = vld [vmem:[%s3556_s2 + $0x2c] ss:$16 sps:$4 sm:$0xff]  }
  0x19   :  { %v2878_v8 = vld [vmem:[%s3554_s0 + $0x14] ss:$8 sps:$4 sm:$0xff]   ;;  %v2239_v9 = vld [vmem:[%s3556_s2 + $0x20] ss:$16 sps:$4 sm:$0xff]   ;;  %v2242_v10 = vld [vmem:[%s3556_s2 + $0x28] ss:$16 sps:$4 sm:$0xff]  }
  0x1a   :  { %v2250_v11 = vld [vmem:[%s3556_s2 + $0x44] ss:$16 sps:$4 sm:$0xff]   ;;  %v2253_v12 = vld [vmem:[%s3556_s2 + $0x4c] ss:$16 sps:$4 sm:$0xff]   ;;  %v2899_v13 = vld [vmem:[%s3554_s0 + $0x10] ss:$8 sps:$4 sm:$0xff]  }
  0x1b   :  { %508 = vmatpush1.bf16.msra.mxu0 %v2174_v26  ;;  %621 = vmatpush1.bf16.msra.mxu1 %v2175_v27  ;;  %v2248_v14 = vld [vmem:[%s3556_s2 + $0x40] ss:$16 sps:$4 sm:$0xff]   ;;  %v2251_v15 = vld [vmem:[%s3556_s2 + $0x48] ss:$16 sps:$4 sm:$0xff]   ;;  %v2256_v16 = vld [vmem:[%s3556_s2 + $0x64] ss:$16 sps:$4 sm:$0xff]  }
  0x1c   :  { %509 = vmatprep.subr.bf16.mxu0 %v2176_v28  ;;  %622 = vmatprep.subr.bf16.mxu1 %v2178_v29  ;;  %v2259_v17 = vld [vmem:[%s3556_s2 + $0x6c] ss:$16 sps:$4 sm:$0xff]   ;;  %v2254_v19 = vld [vmem:[%s3556_s2 + $0x60] ss:$16 sps:$4 sm:$0xff]   ;;  %v2257_v20 = vld [vmem:[%s3556_s2 + $0x68] ss:$16 sps:$4 sm:$0xff]  }
  0x1d   :  { %v2916_v18 = vld [vmem:[%s3554_s0 + $0x24] ss:$8 sps:$4 sm:$0xff]   ;;  %v2937_v23 = vld [vmem:[%s3554_s0 + $0x20] ss:$8 sps:$4 sm:$0xff]   ;;  %v2954_v28 = vld [vmem:[%s3554_s0 + $0x34] ss:$8 sps:$4 sm:$0xff]  }
  0x1e   :  { %v2265_v21 = vld [vmem:[%s3556_s2 + $0x84] ss:$16 sps:$4 sm:$0xff]   ;;  %v2268_v22 = vld [vmem:[%s3556_s2 + $0x8c] ss:$16 sps:$4 sm:$0xff]   ;;  %v2263_v24 = vld [vmem:[%s3556_s2 + $0x80] ss:$16 sps:$4 sm:$0xff]  }
  0x1f   :  { %510 = vmatpush1.bf16.msra.mxu0 %v2180_v30  ;;  %623 = vmatpush1.bf16.msra.mxu1 %v2181_v31  ;;  %v2266_v25 = vld [vmem:[%s3556_s2 + $0x88] ss:$16 sps:$4 sm:$0xff]   ;;  %v2271_v26 = vld [vmem:[%s3556_s2 + $0xa4] ss:$16 sps:$4 sm:$0xff]   ;;  %v2274_v27 = vld [vmem:[%s3556_s2 + $0xac] ss:$16 sps:$4 sm:$0xff]  }
  0x20   :  { %511 = vmatprep.subr.bf16.mxu0 %v2182_v32  ;;  %624 = vmatprep.subr.bf16.mxu1 %v2184_v33  ;;  %v2269_v29 = vld [vmem:[%s3556_s2 + $0xa0] ss:$16 sps:$4 sm:$0xff]   ;;  %v2272_v30 = vld [vmem:[%s3556_s2 + $0xa8] ss:$16 sps:$4 sm:$0xff]   ;;  %v2280_v31 = vld [vmem:[%s3556_s2 + $0xc4] ss:$16 sps:$4 sm:$0xff]  }
  0x21   :  { %v2283_v32 = vld [vmem:[%s3556_s2 + $0xcc] ss:$16 sps:$4 sm:$0xff]   ;;  %v2975_v33 = vld [vmem:[%s3554_s0 + $0x30] ss:$8 sps:$4 sm:$0xff]  }
  0x23   :  { %512 = vmatpush1.bf16.msra.mxu0 %v2186_v34  ;;  %625 = vmatpush1.bf16.msra.mxu1 %v2187_v35  ;;  %v2278_v34 = vld [vmem:[%s3556_s2 + $0xc0] ss:$16 sps:$4 sm:$0xff]   ;;  %v2281_v35 = vld [vmem:[%s3556_s2 + $0xc8] ss:$16 sps:$4 sm:$0xff]  }
  0x24   :  { %513 = vmatprep.subr.bf16.mxu0 %v2188_v36  ;;  %626 = vmatprep.subr.bf16.mxu1 %v2190_v37  ;;  %v2286_v36 = vld [vmem:[%s3556_s2 + $0xe4] ss:$16 sps:$4 sm:$0xff]   ;;  %v2289_v37 = vld [vmem:[%s3556_s2 + $0xec] ss:$16 sps:$4 sm:$0xff]  }
  0x27   :  { %514 = vmatpush1.bf16.msra.mxu0 %v2192_v38  ;;  %627 = vmatpush1.bf16.msra.mxu1 %v2193_v39  ;;  %v2992_v38 = vld [vmem:[%s3554_s0 + $0x44] ss:$8 sps:$4 sm:$0xff]   ;;  %v2284_v39 = vld [vmem:[%s3556_s2 + $0xe0] ss:$16 sps:$4 sm:$0xff]  }
  0x28   :  { %515 = vmatprep.subr.bf16.mxu0 %v2194_v40  ;;  %628 = vmatprep.subr.bf16.mxu1 %v2196_v41  ;;  %v2287_v40 = vld [vmem:[%s3556_s2 + $0xe8] ss:$16 sps:$4 sm:$0xff]   ;;  %v2295_v41 = vld [vmem:[%s3556_s2 + $0x104] ss:$16 sps:$4 sm:$0xff]  }
  0x2b   :  { %516 = vmatpush1.bf16.msra.mxu0 %v2198_v42  ;;  %629 = vmatpush1.bf16.msra.mxu1 %v2199_v43  ;;  %v2298_v42 = vld [vmem:[%s3556_s2 + $0x10c] ss:$16 sps:$4 sm:$0xff]   ;;  %v3013_v43 = vld [vmem:[%s3554_s0 + $0x40] ss:$8 sps:$4 sm:$0xff]  }
  0x2c   :  { %517 = vmatprep.subr.bf16.mxu0 %v2200_v44  ;;  %630 = vmatprep.subr.bf16.mxu1 %v2202_v45  ;;  %v2293_v44 = vld [vmem:[%s3556_s2 + $0x100] ss:$16 sps:$4 sm:$0xff]   ;;  %v2296_v45 = vld [vmem:[%s3556_s2 + $0x108] ss:$16 sps:$4 sm:$0xff]  }
  0x2f   :  { %518 = vmatpush1.bf16.msra.mxu0 %v2204_v46  ;;  %631 = vmatpush1.bf16.msra.mxu1 %v2205_v47 }
  0x30   :  { %519 = vmatprep.subr.bf16.mxu0 %v2206_v49  ;;  %632 = vmatprep.subr.bf16.mxu1 %v2208_v50 }
  0x33   :  { %520 = vmatpush1.bf16.msra.mxu0 %v2210_v51  ;;  %633 = vmatpush1.bf16.msra.mxu1 %v2211_v52 }
  0x34   :  { %521 = vmatprep.subr.bf16.mxu0 %v2212_v53  ;;  %634 = vmatprep.subr.bf16.mxu1 %v2214_v54 }
  0x37   :  { %522 = vmatpush1.bf16.msra.mxu0 %v2216_v55  ;;  %635 = vmatpush1.bf16.msra.mxu1 %v2217_v56 }
  0x38   :  { %523 = vmatprep.subr.bf16.mxu0 %v2218_v57  ;;  %636 = vmatprep.subr.bf16.mxu1 %v2220_v58 }
  0x3b   :  { %524 = vmatpush1.bf16.msra.mxu0 %v2222_v59  ;;  %637 = vmatpush1.bf16.msra.mxu1 %v2223_v60 }
  0x3c   :  { %525 = vmatprep.subr.bf16.mxu0 %v2224_v61  ;;  %638 = vmatprep.subr.bf16.mxu1 %v2226_v62 }
  0x3f   :  { %526 = vmatpush1.bf16.msra.mxu0 %v2228_v63  ;;  %639 = vmatpush1.bf16.msra.mxu1 %v2229_v0 }
  0x40   :  { %1105 = vmatprep.subr.bf16.mxu0 %v2235_v1  ;;  %1218 = vmatprep.subr.bf16.mxu1 %v2238_v2 }
  0x42   :  { %528 = vmatmul.mubr.bf16.vlgmr.msra.gmra.mrb[0].mxu0 %v2861_v3  ;;  %641 = vmatmul.mubr.bf16.vlgmr.msra.gmra.mrb[0].mxu1 %v2861_v3 }
  0x43   :  { %1106 = vmatpush1.bf16.msra.mxu0 %v2233_v4  ;;  %1219 = vmatpush1.bf16.msra.mxu1 %v2236_v5 }
  0x44   :  { %1107 = vmatprep.subr.bf16.mxu0 %v2241_v6  ;;  %1220 = vmatprep.subr.bf16.mxu1 %v2244_v7 }
  0x45   :  { %537 = vmatprep.mubr.bf16.mxu0 %v2878_v8  ;;  %650 = vmatprep.mubr.bf16.mxu1 %v2878_v8 }
  0x47   :  { %1108 = vmatpush1.bf16.msra.mxu0 %v2239_v9  ;;  %1221 = vmatpush1.bf16.msra.mxu1 %v2242_v10 }
  0x48   :  { %1109 = vmatprep.subr.bf16.mxu0 %v2250_v11  ;;  %1222 = vmatprep.subr.bf16.mxu1 %v2253_v12 }
  0x4a   :  { %538 = vmatmul.mubr.bf16.gmra.mrb[4].mxu0 %v2899_v13  ;;  %651 = vmatmul.mubr.bf16.gmra.mrb[4].mxu1 %v2899_v13 }
  0x4b   :  { %1110 = vmatpush1.bf16.msra.mxu0 %v2248_v14  ;;  %1223 = vmatpush1.bf16.msra.mxu1 %v2251_v15 }
  0x4c   :  { %1111 = vmatprep.subr.bf16.mxu0 %v2256_v16  ;;  %1224 = vmatprep.subr.bf16.mxu1 %v2259_v17 }
  0x4d   :  { %547 = vmatprep.mubr.bf16.mxu0 %v2916_v18  ;;  %660 = vmatprep.mubr.bf16.mxu1 %v2916_v18 }
  0x4f   :  { %1112 = vmatpush1.bf16.msra.mxu0 %v2254_v19  ;;  %1225 = vmatpush1.bf16.msra.mxu1 %v2257_v20 }
  0x50   :  { %1113 = vmatprep.subr.bf16.mxu0 %v2265_v21  ;;  %1226 = vmatprep.subr.bf16.mxu1 %v2268_v22 }
  0x52   :  { %548 = vmatmul.mubr.bf16.gmra.mrb[8].mxu0 %v2937_v23  ;;  %661 = vmatmul.mubr.bf16.gmra.mrb[8].mxu1 %v2937_v23 }
  0x53   :  { %1114 = vmatpush1.bf16.msra.mxu0 %v2263_v24  ;;  %1227 = vmatpush1.bf16.msra.mxu1 %v2266_v25 }
  0x54   :  { %1115 = vmatprep.subr.bf16.mxu0 %v2271_v26  ;;  %1228 = vmatprep.subr.bf16.mxu1 %v2274_v27 }
  0x55   :  { %557 = vmatprep.mubr.bf16.mxu0 %v2954_v28  ;;  %670 = vmatprep.mubr.bf16.mxu1 %v2954_v28 }
  0x57   :  { %1116 = vmatpush1.bf16.msra.mxu0 %v2269_v29  ;;  %1229 = vmatpush1.bf16.msra.mxu1 %v2272_v30 }
  0x58   :  { %1117 = vmatprep.subr.bf16.mxu0 %v2280_v31  ;;  %1230 = vmatprep.subr.bf16.mxu1 %v2283_v32 }
  0x5a   :  { %558 = vmatmul.mubr.bf16.gmra.mrb[12].mxu0 %v2975_v33  ;;  %671 = vmatmul.mubr.bf16.gmra.mrb[12].mxu1 %v2975_v33 }
  0x5b   :  { %1118 = vmatpush1.bf16.msra.mxu0 %v2278_v34  ;;  %1231 = vmatpush1.bf16.msra.mxu1 %v2281_v35 }
  0x5c   :  { %1119 = vmatprep.subr.bf16.mxu0 %v2286_v36  ;;  %1232 = vmatprep.subr.bf16.mxu1 %v2289_v37 }
  0x5d   :  { %567 = vmatprep.mubr.bf16.mxu0 %v2992_v38  ;;  %680 = vmatprep.mubr.bf16.mxu1 %v2992_v38 }
  0x5f   :  { %1120 = vmatpush1.bf16.msra.mxu0 %v2284_v39  ;;  %1233 = vmatpush1.bf16.msra.mxu1 %v2287_v40 }
  0x60   :  { %8 = vsyncpa [#allocation3], 0  ;;  %1121 = vmatprep.subr.bf16.mxu0 %v2295_v41  ;;  %1234 = vmatprep.subr.bf16.mxu1 %v2298_v42  ;;  %v2301_v46 = vld [vmem:[%s3556_s2 + $0x124] ss:$16 sps:$4 sm:$0xff]   ;;  %v2304_v47 = vld [vmem:[%s3556_s2 + $0x12c] ss:$16 sps:$4 sm:$0xff]  }
  0x61   :  { %v3030_v49 = vld [vmem:[%s3554_s0 + $0x54] ss:$8 sps:$4 sm:$0xff]   ;;  %v2299_v50 = vld [vmem:[%s3556_s2 + $0x120] ss:$16 sps:$4 sm:$0xff]   ;;  %v2302_v51 = vld [vmem:[%s3556_s2 + $0x128] ss:$16 sps:$4 sm:$0xff]  }
  0x62   :  { %568 = vmatmul.mubr.bf16.gmra.mrb[16].mxu0 %v3013_v43  ;;  %681 = vmatmul.mubr.bf16.gmra.mrb[16].mxu1 %v3013_v43  ;;  %v2310_v52 = vld [vmem:[%s3556_s2 + $0x144] ss:$16 sps:$4 sm:$0xff]   ;;  %v2313_v53 = vld [vmem:[%s3556_s2 + $0x14c] ss:$16 sps:$4 sm:$0xff]   ;;  %v3051_v54 = vld [vmem:[%s3554_s0 + $0x50] ss:$8 sps:$4 sm:$0xff]  }
  0x63   :  { %1122 = vmatpush1.bf16.msra.mxu0 %v2293_v44  ;;  %1235 = vmatpush1.bf16.msra.mxu1 %v2296_v45  ;;  %v2308_v55 = vld [vmem:[%s3556_s2 + $0x140] ss:$16 sps:$4 sm:$0xff]   ;;  %v2311_v56 = vld [vmem:[%s3556_s2 + $0x148] ss:$16 sps:$4 sm:$0xff]   ;;  %v2316_v57 = vld [vmem:[%s3556_s2 + $0x164] ss:$16 sps:$4 sm:$0xff]  }
  0x64   :  { %1123 = vmatprep.subr.bf16.mxu0 %v2301_v46  ;;  %1236 = vmatprep.subr.bf16.mxu1 %v2304_v47  ;;  %v2319_v58 = vld [vmem:[%s3556_s2 + $0x16c] ss:$16 sps:$4 sm:$0xff]   ;;  %v2314_v60 = vld [vmem:[%s3556_s2 + $0x160] ss:$16 sps:$4 sm:$0xff]   ;;  %v2317_v61 = vld [vmem:[%s3556_s2 + $0x168] ss:$16 sps:$4 sm:$0xff]  }
  0x65   :  { %577 = vmatprep.mubr.bf16.mxu0 %v3030_v49  ;;  %690 = vmatprep.mubr.bf16.mxu1 %v3030_v49  ;;  %v3068_v59 = vld [vmem:[%s3554_s0 + $0x64] ss:$8 sps:$4 sm:$0xff]   ;;  %v3089_v0 = vld [vmem:[%s3554_s0 + $0x60] ss:$8 sps:$4 sm:$0xff]   ;;  %v2335_v6 = vld [vmem:[%s3554_s0 + $0x74] ss:$8 sps:$4 sm:$0xff]  }
  0x66   :  { %v2325_v62 = vld [vmem:[%s3556_s2 + $0x184] ss:$16 sps:$4 sm:$0xff]   ;;  %v2328_v63 = vld [vmem:[%s3556_s2 + $0x18c] ss:$16 sps:$4 sm:$0xff]   ;;  %v2323_v1 = vld [vmem:[%s3556_s2 + $0x180] ss:$16 sps:$4 sm:$0xff]  }
  0x67   :  { %1124 = vmatpush1.bf16.msra.mxu0 %v2299_v50  ;;  %1237 = vmatpush1.bf16.msra.mxu1 %v2302_v51  ;;  %v2326_v2 = vld [vmem:[%s3556_s2 + $0x188] ss:$16 sps:$4 sm:$0xff]   ;;  %v2331_v4 = vld [vmem:[%s3556_s2 + $0x1a4] ss:$16 sps:$4 sm:$0xff]   ;;  %v2334_v5 = vld [vmem:[%s3556_s2 + $0x1ac] ss:$16 sps:$4 sm:$0xff]  }
  0x68   :  { %1125 = vmatprep.subr.bf16.mxu0 %v2310_v52  ;;  %1238 = vmatprep.subr.bf16.mxu1 %v2313_v53  ;;  %v2329_v7 = vld [vmem:[%s3556_s2 + $0x1a0] ss:$16 sps:$4 sm:$0xff]   ;;  %v2332_v9 = vld [vmem:[%s3556_s2 + $0x1a8] ss:$16 sps:$4 sm:$0xff]   ;;  %v2340_v10 = vld [vmem:[%s3556_s2 + $0x1c4] ss:$16 sps:$4 sm:$0xff]  }
  0x69   :  { %v2343_v11 = vld [vmem:[%s3556_s2 + $0x1cc] ss:$16 sps:$4 sm:$0xff]   ;;  %v2337_v12 = vld [vmem:[%s3554_s0 + $0x70] ss:$8 sps:$4 sm:$0xff]   ;;  %v2346_v16 = vld [vmem:[%s3556_s2 + $0x1e4] ss:$16 sps:$4 sm:$0xff]  }
  0x6a   :  { %578 = vmatmul.mubr.bf16.gmra.mrb[20].mxu0 %v3051_v54  ;;  %691 = vmatmul.mubr.bf16.gmra.mrb[20].mxu1 %v3051_v54  ;;  %v2338_v14 = vld [vmem:[%s3556_s2 + $0x1c0] ss:$16 sps:$4 sm:$0xff]   ;;  %v2341_v15 = vld [vmem:[%s3556_s2 + $0x1c8] ss:$16 sps:$4 sm:$0xff]   ;;  %v2349_v17 = vld [vmem:[%s3556_s2 + $0x1ec] ss:$16 sps:$4 sm:$0xff]  }
  0x6b   :  { %1126 = vmatpush1.bf16.msra.mxu0 %v2308_v55  ;;  %1239 = vmatpush1.bf16.msra.mxu1 %v2311_v56  ;;  %v2344_v19 = vld [vmem:[%s3556_s2 + $0x1e0] ss:$16 sps:$4 sm:$0xff]   ;;  %v2347_v20 = vld [vmem:[%s3556_s2 + $0x1e8] ss:$16 sps:$4 sm:$0xff]   ;;  %s2630_s2 = smov [#allocation2]  }
  0x6c   :  { %1127 = vmatprep.subr.bf16.mxu0 %v2316_v57  ;;  %1240 = vmatprep.subr.bf16.mxu1 %v2319_v58  ;;  %s1912_s23 = sshll.u32 %s2630_s2, 4  ;;  %s1913_s23 = int_to_ptr.vmem [resolvable:$true] %s1912_s23 }
  0x6d   :  { %587 = vmatprep.mubr.bf16.mxu0 %v3068_v59  ;;  %700 = vmatprep.mubr.bf16.mxu1 %v3068_v59  ;;  %s2606_s24 = scalar_lea.vmem %s1913_s23, 8192  ;;  %p2611_p1 = scmp.lt.s32.totalorder %s1913_s23, %s1913_s23 }
  0x6e   :  { %p2607_p0 = scmp.ne.s32.totalorder %s1913_s23, %s2606_s24  ;;  %p2612_p2 = scmp.lt.s32.totalorder %s2606_s24, %s2606_s24 }
  0x6f   :  { %1128 = vmatpush1.bf16.msra.mxu0 %v2314_v60  ;;  %1241 = vmatpush1.bf16.msra.mxu1 %v2317_v61 }
  0x70   :  { %1129 = vmatprep.subr.bf16.mxu0 %v2325_v62  ;;  %1242 = vmatprep.subr.bf16.mxu1 %v2328_v63  ;;  %p2613_p3 = por %p2612_p2, %p2611_p1 }
  0x72   :  { %588 = vmatmul.mubr.bf16.gmra.mrb[24].mxu0 %v3089_v0  ;;  %701 = vmatmul.mubr.bf16.gmra.mrb[24].mxu1 %v3089_v0  ;;  %p2614_p4 = pnand %p2613_p3, %p2607_p0 }
  0x73   :  { %1130 = vmatpush1.bf16.msra.mxu0 %v2323_v1  ;;  %1243 = vmatpush1.bf16.msra.mxu1 %v2326_v2 }
  0x74   :  { %1131 = vmatprep.subr.bf16.mxu0 %v2331_v4  ;;  %1244 = vmatprep.subr.bf16.mxu1 %v2334_v5 }
  0x75   :  { %597 = vmatprep.mubr.bf16.mxu0 %v2335_v6  ;;  %710 = vmatprep.mubr.bf16.mxu1 %v2335_v6 }
  0x77   :  { %1132 = vmatpush1.bf16.msra.mxu0 %v2329_v7  ;;  %1245 = vmatpush1.bf16.msra.mxu1 %v2332_v9 }
  0x78   :  { %1133 = vmatprep.subr.bf16.mxu0 %v2340_v10  ;;  %1246 = vmatprep.subr.bf16.mxu1 %v2343_v11 }
  0x7a   :  { %598 = vmatmul.mubr.bf16.gmra.mrb[28].mxu0 %v2337_v12  ;;  %711 = vmatmul.mubr.bf16.gmra.mrb[28].mxu1 %v2337_v12 }
  0x7b   :  { %1134 = vmatpush1.bf16.msra.mxu0 %v2338_v14  ;;  %1247 = vmatpush1.bf16.msra.mxu1 %v2341_v15 }
  0x7c   :  { %1135 = vmatprep.subr.bf16.mxu0 %v2346_v16  ;;  %1248 = vmatprep.subr.bf16.mxu1 %v2349_v17 }
  0x7d   :  { %1137 = vmatprep.mubr.bf16.mxu0 %v2800_v48  ;;  %1250 = vmatprep.mubr.bf16.mxu1 %v2800_v48 }
  0x7f   :  { %1136 = vmatpush1.bf16.msra.mxu0 %v2344_v19  ;;  %1249 = vmatpush1.bf16.msra.mxu1 %v2347_v20 }
  0x82   :  { %1138 = vmatmul.mubr.bf16.vlgmr.msra.gmra.mrb[32].mxu0 %v2861_v3  ;;  %1251 = vmatmul.mubr.bf16.vlgmr.msra.gmra.mrb[32].mxu1 %v2861_v3 }
  0x83   :  { %1147 = vmatprep.mubr.bf16.mxu0 %v2878_v8  ;;  %1260 = vmatprep.mubr.bf16.mxu1 %v2878_v8 }
  0x8a   :  { %1148 = vmatmul.mubr.bf16.gmra.mrb[36].mxu0 %v2899_v13  ;;  %1261 = vmatmul.mubr.bf16.gmra.mrb[36].mxu1 %v2899_v13 }
  0x8b   :  { %1157 = vmatprep.mubr.bf16.mxu0 %v2916_v18  ;;  %1270 = vmatprep.mubr.bf16.mxu1 %v2916_v18 }
  0x92   :  { %1158 = vmatmul.mubr.bf16.gmra.mrb[40].mxu0 %v2937_v23  ;;  %1271 = vmatmul.mubr.bf16.gmra.mrb[40].mxu1 %v2937_v23 }
  0x93   :  { %1167 = vmatprep.mubr.bf16.mxu0 %v2954_v28  ;;  %1280 = vmatprep.mubr.bf16.mxu1 %v2954_v28 }
  0x9a   :  { %1168 = vmatmul.mubr.bf16.gmra.mrb[44].mxu0 %v2975_v33  ;;  %1281 = vmatmul.mubr.bf16.gmra.mrb[44].mxu1 %v2975_v33 }
  0x9b   :  { %1177 = vmatprep.mubr.bf16.mxu0 %v2992_v38  ;;  %1290 = vmatprep.mubr.bf16.mxu1 %v2992_v38 }
  0xa2   :  { %1178 = vmatmul.mubr.bf16.gmra.mrb[48].mxu0 %v3013_v43  ;;  %1291 = vmatmul.mubr.bf16.gmra.mrb[48].mxu1 %v3013_v43 }
  0xa3   :  { %1187 = vmatprep.mubr.bf16.mxu0 %v3030_v49  ;;  %1300 = vmatprep.mubr.bf16.mxu1 %v3030_v49 }
  0xaa   :  { %1188 = vmatmul.mubr.bf16.gmra.mrb[52].mxu0 %v3051_v54  ;;  %1301 = vmatmul.mubr.bf16.gmra.mrb[52].mxu1 %v3051_v54 }
  0xab   :  { %1197 = vmatprep.mubr.bf16.mxu0 %v3068_v59  ;;  %1310 = vmatprep.mubr.bf16.mxu1 %v3068_v59 }
  0xb2   :  { %1198 = vmatmul.mubr.bf16.gmra.mrb[56].mxu0 %v3089_v0  ;;  %1311 = vmatmul.mubr.bf16.gmra.mrb[56].mxu1 %v3089_v0 }
  0xb3   :  { %1207 = vmatprep.mubr.bf16.mxu0 %v2335_v6  ;;  %1320 = vmatprep.mubr.bf16.mxu1 %v2335_v6 }
  0xba   :  { %1208 = vmatmul.mubr.bf16.gmra.mrb[60].mxu0 %v2337_v12  ;;  %1321 = vmatmul.mubr.bf16.gmra.mrb[60].mxu1 %v2337_v12 }
 0x115   :  { %v3169_v48 = vpop.f32.mrb[0].mxu0  ;;  %v3171_v3 = vpop.f32.mrb[0].mxu1 }
 0x116   :  { %v2067_v8 = vmul.f32 -1.442695, %v3169_v48  ;;  %v2069_v13 = vmul.f32 -1.442695, %v3171_v3  ;;  %v3175_v18 = vpop.f32.mrb[1].mxu0  ;;  %v3177_v21 = vpop.f32.mrb[1].mxu1 }
 0x117   :  { %v2068_v22 = vmul.f32 -1.442695, %v3175_v18  ;;  %v2070_v23 = vmul.f32 -1.442695, %v3177_v21  ;;  %v3181_v24 = vpop.f32.mrb[2].mxu0  ;;  %v3183_v25 = vpop.f32.mrb[2].mxu1 }
 0x118   :  { %2350 = vpow2.f32 %v2067_v8  ;;  %v2071_v26 = vmul.f32 -1.442695, %v3181_v24  ;;  %v3186_v27 = vpop.f32.mrb[3].mxu0  ;;  %v3188_v28 = vpop.f32.mrb[3].mxu1  ;;  %v2073_v29 = vmul.f32 -1.442695, %v3183_v25 }
 0x119   :  { %2352 = vpow2.f32 %v2069_v13  ;;  %v2072_v30 = vmul.f32 -1.442695, %v3186_v27  ;;  %v2074_v31 = vmul.f32 -1.442695, %v3188_v28 }
 0x11a   :  { %2354 = vpow2.f32 %v2068_v22 }
 0x11b   :  { %2356 = vpow2.f32 %v2070_v23 }
 0x11c   :  { %2358 = vpow2.f32 %v2071_v26 }
 0x11d   :  { %2360 = vpow2.f32 %v2073_v29  ;;  %v3193_v32 = vpop.f32.mrb[4].mxu0  ;;  %v3195_v33 = vpop.f32.mrb[4].mxu1 }
 0x11e   :  { %2362 = vpow2.f32 %v2072_v30  ;;  %v2075_v34 = vmul.f32 -1.442695, %v3193_v32  ;;  %v2077_v35 = vmul.f32 -1.442695, %v3195_v33  ;;  %v3199_v36 = vpop.f32.mrb[5].mxu0  ;;  %v3201_v37 = vpop.f32.mrb[5].mxu1 }
 0x11f   :  { %2364 = vpow2.f32 %v2074_v31  ;;  %v2076_v38 = vmul.f32 -1.442695, %v3199_v36  ;;  %v2078_v39 = vmul.f32 -1.442695, %v3201_v37  ;;  %v3205_v40 = vpop.f32.mrb[6].mxu0  ;;  %v3207_v41 = vpop.f32.mrb[6].mxu1 }
 0x120   :  { %2366 = vpow2.f32 %v2075_v34  ;;  %v2079_v42 = vmul.f32 -1.442695, %v3205_v40  ;;  %v3210_v43 = vpop.f32.mrb[7].mxu0  ;;  %v3212_v44 = vpop.f32.mrb[7].mxu1  ;;  %v2081_v8 = vmul.f32 -1.442695, %v3207_v41 }
 0x121   :  { %2368 = vpow2.f32 %v2077_v35  ;;  %v2080_v26 = vmul.f32 -1.442695, %v3210_v43  ;;  %v2082_v34 = vmul.f32 -1.442695, %v3212_v44 }
 0x122   :  { %v2351_v45 = vpop.eup %2350  ;;  %2370 = vpow2.f32 %v2076_v38 }
 0x123   :  { %v2353_v46 = vpop.eup %2352  ;;  %v1523_v47 = vadd.f32 1.0, %v2351_v45  ;;  %2372 = vpow2.f32 %v2078_v39 }
 0x124   :  { %v2355_v49 = vpop.eup %2354  ;;  %v1525_v50 = vadd.f32 1.0, %v2353_v46  ;;  %2374 = vpow2.f32 %v2079_v42 }
 0x125   :  { %v2357_v51 = vpop.eup %2356  ;;  %2376 = vrcp.f32 %v1523_v47  ;;  %v1524_v52 = vadd.f32 1.0, %v2355_v49  ;;  %v3214_v53 = vpop.f32.mrb[8].mxu0 }
 0x126   :  { %3596 = vst [vmem:[#allocation5_spill] sm:$0xff] %v3214_v53  ;;  %v3216_v54 = vpop.f32.mrb[8].mxu1  ;;  %v2359_v55 = vpop.eup %2358  ;;  %2378 = vrcp.f32 %v1525_v50  ;;  %v1526_v56 = vadd.f32 1.0, %v2357_v51  ;;  %v2083_v42 = vmul.f32 -1.442695, %v3214_v53 }
 0x127   :  { %3597 = vst [vmem:[#allocation6_spill] sm:$0xff] %v3216_v54  ;;  %v3218_v57 = vpop.f32.mrb[9].mxu0  ;;  %v2361_v58 = vpop.eup %2360  ;;  %2380 = vrcp.f32 %v1524_v52  ;;  %v1527_v59 = vadd.f32 1.0, %v2359_v55  ;;  %v2085_v47 = vmul.f32 -1.442695, %v3216_v54 }
 0x128   :  { %3598 = vst [vmem:[#allocation7_spill] sm:$0xff] %v3218_v57  ;;  %v3220_v60 = vpop.f32.mrb[9].mxu1  ;;  %v3222_v61 = vpop.f32.mrb[10].mxu0  ;;  %2382 = vrcp.f32 %v1526_v56  ;;  %v1529_v63 = vadd.f32 1.0, %v2361_v58  ;;  %v2084_v50 = vmul.f32 -1.442695, %v3218_v57 }
 0x129   :  { %3599 = vst [vmem:[#allocation8_spill] sm:$0xff] %v3220_v60  ;;  %3600 = vst [vmem:[#allocation9_spill] sm:$0xff] %v3222_v61  ;;  %v2363_v62 = vpop.eup %2362  ;;  %v3224_v0 = vpop.f32.mrb[10].mxu1  ;;  %2384 = vrcp.f32 %v1527_v59  ;;  %v2086_v52 = vmul.f32 -1.442695, %v3220_v60 }
 0x12a   :  { %3601 = vst [vmem:[#allocation10_spill] sm:$0xff] %v3224_v0  ;;  %v2365_v1 = vpop.eup %2364  ;;  %v1528_v2 = vadd.f32 1.0, %v2363_v62  ;;  %v3226_v4 = vpop.f32.mrb[11].mxu0  ;;  %2386 = vrcp.f32 %v1529_v63  ;;  %v2087_v56 = vmul.f32 -1.442695, %v3222_v61 }
 0x12b   :  { %3602 = vst [vmem:[#allocation11_spill] sm:$0xff] %v3226_v4  ;;  %v3228_v5 = vpop.f32.mrb[11].mxu1  ;;  %v2367_v6 = vpop.eup %2366  ;;  %v1530_v7 = vadd.f32 1.0, %v2365_v1  ;;  %v2089_v63 = vmul.f32 -1.442695, %v3224_v0 }
 0x12c   :  { %3603 = vst [vmem:[#allocation12_spill] sm:$0xff] %v3228_v5  ;;  %v2369_v9 = vpop.eup %2368  ;;  %2388 = vrcp.f32 %v1528_v2  ;;  %v1531_v10 = vadd.f32 1.0, %v2367_v6 }
 0x12d   :  { %v2371_v11 = vpop.eup %2370  ;;  %2390 = vrcp.f32 %v1530_v7  ;;  %v1533_v12 = vadd.f32 1.0, %v2369_v9  ;;  %v3230_v16 = vpop.f32.mrb[12].mxu0  ;;  %v2088_v7 = vmul.f32 -1.442695, %v3226_v4 }
 0x12e   :  { %v2373_v14 = vpop.eup %2372  ;;  %2392 = vrcp.f32 %v1531_v10  ;;  %v1532_v15 = vadd.f32 1.0, %v2371_v11  ;;  %3604 = vst [vmem:[#allocation13_spill] sm:$0xff] %v3230_v16  ;;  %v3232_v17 = vpop.f32.mrb[12].mxu1 }
 0x12f   :  { %3605 = vst [vmem:[#allocation14_spill] sm:$0xff] %v3232_v17  ;;  %v2375_v19 = vpop.eup %2374  ;;  %2394 = vrcp.f32 %v1533_v12  ;;  %v1534_v20 = vadd.f32 1.0, %v2373_v14  ;;  %v3235_v13 = vpop.f32.mrb[13].mxu0  ;;  %v2090_v12 = vmul.f32 -1.442695, %v3228_v5 }
 0x130   :  { %v3237_v22 = vpop.eup %2376  ;;  %2396 = vrcp.f32 %v1532_v15  ;;  %v1535_v23 = vadd.f32 1.0, %v2375_v19  ;;  %v3240_v29 = vpop.f32.mrb[13].mxu1 }
 0x131   :  { %3606 = vst [vmem:[#allocation15_spill] sm:$0xff] %v3240_v29  ;;  %v3242_v30 = vpop.f32.mrb[14].mxu0  ;;  %v3244_v31 = vpop.eup %2378  ;;  %2398 = vrcp.f32 %v1534_v20  ;;  %v2091_v20 = vmul.f32 -1.442695, %v3230_v16 }
 0x132   :  { %3607 = vst [vmem:[#allocation16_spill] sm:$0xff] %v3242_v30  ;;  %v3247_v35 = vpop.f32.mrb[14].mxu1  ;;  %v3249_v38 = vpop.f32.mrb[15].mxu0  ;;  %2400 = vrcp.f32 %v1535_v23  ;;  %v2093_v23 = vmul.f32 -1.442695, %v3232_v17 }
 0x133   :  { %3608 = vst [vmem:[#allocation17_spill] sm:$0xff] %v3247_v35  ;;  %3609 = vst [vmem:[#allocation18_spill] sm:$0xff] %v3249_v38  ;;  %v3251_v39 = vpop.eup %2380  ;;  %v3254_v45 = vpop.f32.mrb[15].mxu1  ;;  %2402 = vpow2.f32 %v2081_v8 }
 0x134   :  { %3610 = vst [vmem:[#allocation19_spill] sm:$0xff] %v3254_v45  ;;  %v3256_v46 = vpop.eup %2382  ;;  %2404 = vpow2.f32 %v2080_v26 }
 0x135   :  { %v3259_v49 = vpop.eup %2384  ;;  %2406 = vpow2.f32 %v2082_v34  ;;  %v3268_v58 = vpop.f32.mrb[16].mxu0 }
 0x136   :  { %v3262_v51 = vpop.eup %2386  ;;  %2408 = vpow2.f32 %v2083_v42  ;;  %3611 = vst [vmem:[#allocation20_spill] sm:$0xff] %v3268_v58  ;;  %v3270_v59 = vpop.f32.mrb[16].mxu1 }
 0x137   :  { %v3265_v55 = vpop.eup %2388  ;;  %2410 = vpow2.f32 %v2085_v47  ;;  %v3275_v1 = vpop.f32.mrb[17].mxu0 }
 0x138   :  { %v3272_v62 = vpop.eup %2390  ;;  %3612 = vst [vmem:[#allocation21_spill] sm:$0xff] %v3275_v1  ;;  %v3277_v2 = vpop.f32.mrb[17].mxu1  ;;  %2412 = vpow2.f32 %v2084_v50 }
 0x139   :  { %3613 = vst [vmem:[#allocation22_spill] sm:$0xff] %v3277_v2  ;;  %v3279_v6 = vpop.eup %2392  ;;  %v3282_v9 = vpop.f32.mrb[18].mxu0  ;;  %2414 = vpow2.f32 %v2086_v52 }
 0x13a   :  { %3614 = vst [vmem:[#allocation23_spill] sm:$0xff] %v3282_v9  ;;  %v3284_v10 = vpop.f32.mrb[18].mxu1  ;;  %v3286_v11 = vpop.eup %2394  ;;  %2416 = vpow2.f32 %v2087_v56 }
 0x13b   :  { %3615 = vst [vmem:[#allocation24_spill] sm:$0xff] %v3284_v10  ;;  %v3289_v14 = vpop.f32.mrb[19].mxu0  ;;  %v3291_v15 = vpop.f32.mrb[19].mxu1  ;;  %2418 = vpow2.f32 %v2089_v63 }
 0x13c   :  { %3616 = vst [vmem:[#allocation25_spill] sm:$0xff] %v3289_v14  ;;  %v3293_v19 = vpop.eup %2396  ;;  %2420 = vpow2.f32 %v2088_v7 }
 0x13d   :  { %v3296_v8 = vpop.eup %2398  ;;  %2422 = vpow2.f32 %v2090_v12  ;;  %v3301_v50 = vpop.f32.mrb[20].mxu0 }
 0x13e   :  { %v3299_v26 = vpop.eup %2400  ;;  %2424 = vpow2.f32 %v2091_v20  ;;  %v3303_v52 = vpop.f32.mrb[20].mxu1 }
 0x13f   :  { %v2403_v34 = vpop.eup %2402  ;;  %2426 = vpow2.f32 %v2093_v23  ;;  %v3305_v16 = vpop.f32.mrb[21].mxu0 }
 0x140   :  { %v2405_v42 = vpop.eup %2404  ;;  %v1537_v47 = vadd.f32 1.0, %v2403_v34  ;;  %v3307_v4 = vpop.f32.mrb[21].mxu1 }
 0x141   :  { %v2407_v56 = vpop.eup %2406  ;;  %v1536_v5 = vadd.f32 1.0, %v2405_v42  ;;  %v3309_v7 = vpop.f32.mrb[22].mxu0 }
 0x142   :  { %v2409_v63 = vpop.eup %2408  ;;  %2428 = vrcp.f32 %v1537_v47  ;;  %v1538_v17 = vadd.f32 1.0, %v2407_v56  ;;  %v3311_v20 = vpop.f32.mrb[22].mxu1 }
 0x143   :  { %v2411_v12 = vpop.eup %2410  ;;  %2430 = vrcp.f32 %v1536_v5  ;;  %v1539_v34 = vadd.f32 1.0, %v2409_v63  ;;  %3617 = vst [vmem:[#allocation26_spill] sm:$0xff] %v3311_v20  ;;  %v3313_v60 = vpop.f32.mrb[23].mxu0 }
 0x144   :  { %v2413_v0 = vpop.eup %2412  ;;  %2432 = vrcp.f32 %v1538_v17  ;;  %v1541_v61 = vadd.f32 1.0, %v2411_v12  ;;  %3618 = vst [vmem:[#allocation27_spill] sm:$0xff] %v3313_v60  ;;  %v3315_v23 = vpop.f32.mrb[23].mxu1 }
 0x145   :  { %3619 = vst [vmem:[#allocation28_spill] sm:$0xff] %v3315_v23  ;;  %v2415_v42 = vpop.eup %2414  ;;  %2434 = vrcp.f32 %v1539_v34  ;;  %v1540_v47 = vadd.f32 1.0, %v2413_v0  ;;  %v3317_v20 = vpop.f32.mrb[24].mxu0 }
 0x146   :  { %v2417_v56 = vpop.eup %2416  ;;  %2436 = vrcp.f32 %v1541_v61  ;;  %v1542_v57 = vadd.f32 1.0, %v2415_v42  ;;  %v3319_v17 = vpop.f32.mrb[24].mxu1 }
 0x147   :  { %v2419_v54 = vpop.eup %2418  ;;  %2438 = vrcp.f32 %v1540_v47  ;;  %v1543_v53 = vadd.f32 1.0, %v2417_v56  ;;  %3620 = vst [vmem:[#allocation29_spill] sm:$0xff] %v3319_v17  ;;  %v3321_v23 = vpop.f32.mrb[25].mxu0 }
 0x148   :  { %v2421_v5 = vpop.eup %2420  ;;  %2440 = vrcp.f32 %v1542_v57  ;;  %v1545_v63 = vadd.f32 1.0, %v2419_v54  ;;  %3621 = vst [vmem:[#allocation30_spill] sm:$0xff] %v3321_v23  ;;  %v3323_v61 = vpop.f32.mrb[25].mxu1  ;;  %v2092_v54 = vmul.f32 -1.442695, %v3235_v13 }
 0x149   :  { %v2423_v12 = vpop.eup %2422  ;;  %2442 = vrcp.f32 %v1543_v53  ;;  %v1544_v60 = vadd.f32 1.0, %v2421_v5  ;;  %v3325_v42 = vpop.f32.mrb[26].mxu0  ;;  %v2094_v5 = vmul.f32 -1.442695, %v3240_v29 }
 0x14a   :  { %v2425_v34 = vpop.eup %2424  ;;  %2444 = vrcp.f32 %v1545_v63  ;;  %v1546_v0 = vadd.f32 1.0, %v2423_v12  ;;  %3622 = vst [vmem:[#allocation31_spill] sm:$0xff] %v3325_v42  ;;  %v3328_v56 = vpop.f32.mrb[26].mxu1 }
 0x14b   :  { %v2427_v47 = vpop.eup %2426  ;;  %2446 = vrcp.f32 %v1544_v60  ;;  %v1547_v57 = vadd.f32 1.0, %v2425_v34  ;;  %3623 = vst [vmem:[#allocation32_spill] sm:$0xff] %v3328_v56  ;;  %v3333_v23 = vpop.f32.mrb[27].mxu0  ;;  %v2095_v60 = vmul.f32 -1.442695, %v3242_v30 }
 0x14c   :  { %v3330_v17 = vpop.eup %2428  ;;  %2448 = vrcp.f32 %v1546_v0  ;;  %v1549_v53 = vadd.f32 1.0, %v2427_v47  ;;  %3624 = vst [vmem:[#allocation33_spill] sm:$0xff] %v3333_v23  ;;  %v3335_v63 = vpop.f32.mrb[27].mxu1  ;;  %v2097_v56 = vmul.f32 -1.442695, %v3247_v35 }
 0x14d   :  { %3625 = vst [vmem:[#allocation34_spill] sm:$0xff] %v3335_v63  ;;  %v3337_v12 = vpop.eup %2430  ;;  %2450 = vrcp.f32 %v1547_v57  ;;  %v2096_v0 = vmul.f32 -1.442695, %v3249_v38  ;;  %v2098_v63 = vmul.f32 -1.442695, %v3254_v45  ;;  %v3349_v23 = vpop.f32.mrb[28].mxu0 }
 0x14e   :  { %v3340_v34 = vpop.eup %2432  ;;  %2452 = vrcp.f32 %v1549_v53  ;;  %3626 = vst [vmem:[#allocation35_spill] sm:$0xff] %v3349_v23  ;;  %v3351_v57 = vpop.f32.mrb[28].mxu1  ;;  %v2099_v53 = vmul.f32 -1.442695, %v3268_v58 }
 0x14f   :  { %v3343_v42 = vpop.eup %2434  ;;  %2454 = vpow2.f32 %v2092_v54  ;;  %3627 = vst [vmem:[#allocation36_spill] sm:$0xff] %v3351_v57  ;;  %v3356_v35 = vpop.f32.mrb[29].mxu0 }
 0x150   :  { %v3346_v47 = vpop.eup %2436  ;;  %2456 = vpow2.f32 %v2094_v5  ;;  %3628 = vst [vmem:[#allocation37_spill] sm:$0xff] %v3356_v35  ;;  %v3358_v29 = vpop.f32.mrb[29].mxu1  ;;  %v2101_v5 = vmul.f32 -1.442695, %v3270_v59 }
 0x151   :  { %v3353_v30 = vpop.eup %2438  ;;  %2458 = vpow2.f32 %v2095_v60  ;;  %3629 = vst [vmem:[#allocation38_spill] sm:$0xff] %v3358_v29  ;;  %v3363_v38 = vpop.f32.mrb[30].mxu0  ;;  %v2100_v60 = vmul.f32 -1.442695, %v3275_v1 }
 0x152   :  { %v3360_v54 = vpop.eup %2440  ;;  %2460 = vpow2.f32 %v2097_v56  ;;  %3630 = vst [vmem:[#allocation39_spill] sm:$0xff] %v3363_v38  ;;  %v3365_v45 = vpop.f32.mrb[30].mxu1  ;;  %v2102_v56 = vmul.f32 -1.442695, %v3277_v2  ;;  %v1715_v38 = vmul.f32 %v3237_v22, %v3169_v48  ;;  %v1719_v48 = vmul.f32 %v3259_v49, %v3181_v24 }
 0x153   :  { %3631 = vst [vmem:[#allocation40_spill] sm:$0xff] %v3365_v45  ;;  %v3367_v23 = vpop.eup %2442  ;;  %2462 = vpow2.f32 %v2096_v0  ;;  %v3370_v57 = vpop.f32.mrb[31].mxu0  ;;  %v1717_v45 = vmul.f32 %v3244_v31, %v3171_v3  ;;  %v2103_v0 = vmul.f32 -1.442695, %v3282_v9  ;;  %v1721_v3 = vmul.f32 %v3262_v51, %v3183_v25 }
 0x154   :  { %3632 = vst [vmem:[#allocation41_spill] sm:$0xff] %v3370_v57  ;;  %v3372_v58 = vpop.f32.mrb[31].mxu1  ;;  %v3374_v35 = vpop.eup %2444  ;;  %2464 = vpow2.f32 %v2098_v63  ;;  %v1718_v63 = vmul.f32 %v3256_v46, %v3177_v21  ;;  %v2105_v57 = vmul.f32 -1.442695, %v3284_v10  ;;  %v2104_v22 = vmul.f32 -1.442695, %v3289_v14 }
 0x155   :  { %3633 = vst [vmem:[#allocation42_spill] sm:$0xff] %v3372_v58  ;;  %v3377_v29 = vpop.eup %2446  ;;  %2466 = vpow2.f32 %v2099_v53  ;;  %v1716_v58 = vmul.f32 %v3251_v39, %v3175_v18  ;;  %v1720_v18 = vmul.f32 %v3265_v55, %v3186_v27  ;;  %v1722_v21 = vmul.f32 %v3272_v62, %v3188_v28  ;;  %v1139_v24 = vpop.f32.mrb[32].mxu0 }
 0x156   :  { %v3384_v1 = vpop.eup %2448  ;;  %2468 = vpow2.f32 %v2101_v5  ;;  %v3406_v39 = vmul.f32 %v3279_v6, %v3193_v32  ;;  %v1252_v46 = vpop.f32.mrb[32].mxu1  ;;  %v1725_v25 = vmul.f32 %v3286_v11, %v3195_v33  ;;  %v1779_v51 = vmul.f32 %v1715_v38, %v1139_v24 }
 0x157   :  { %v3391_v2 = vpop.eup %2450  ;;  %2470 = vpow2.f32 %v2100_v60  ;;  %v1781_v53 = vmul.f32 %v1717_v45, %v1252_v46  ;;  %v1141_v5 = vpop.f32.mrb[33].mxu0 }
 0x158   :  { %v3398_v31 = vpop.eup %2452  ;;  %2472 = vpow2.f32 %v2102_v56  ;;  %v1254_v60 = vpop.f32.mrb[33].mxu1  ;;  %v1780_v28 = vmul.f32 %v1716_v58, %v1141_v5  ;;  %1843 = vst [vmem:[#allocation2] sm:$0xff] %v1779_v51 }
 0x159   :  { %v2455_v49 = vpop.eup %2454  ;;  %2474 = vpow2.f32 %v2103_v0  ;;  %v1782_v62 = vmul.f32 %v1718_v63, %v1254_v60  ;;  %v1143_v14 = vpop.f32.mrb[34].mxu0  ;;  %1845 = vst [vmem:[#allocation2 + $0x10] sm:$0xff] %v1781_v53  ;;  %v1724_v63 = vmul.f32 %v3293_v19, %v3199_v36  ;;  %v1729_v36 = vmul.f32 %v3330_v17, %v3207_v41 }
 0x15a   :  { %v2457_v27 = vpop.eup %2456  ;;  %v1548_v55 = vadd.f32 1.0, %v2455_v49  ;;  %2476 = vpow2.f32 %v2105_v57  ;;  %v1256_v32 = vpop.f32.mrb[34].mxu1  ;;  %v1783_v10 = vmul.f32 %v1719_v48, %v1143_v14  ;;  %1844 = vst [vmem:[#allocation2 + $0x8] sm:$0xff] %v1780_v28  ;;  %v1726_v48 = vmul.f32 %v3296_v8, %v3201_v37 }
 0x15b   :  { %v2459_v6 = vpop.eup %2458  ;;  %v1550_v56 = vadd.f32 1.0, %v2457_v27  ;;  %2478 = vpow2.f32 %v2104_v22  ;;  %v1785_v9 = vmul.f32 %v1721_v3, %v1256_v32  ;;  %v1145_v33 = vpop.f32.mrb[35].mxu0  ;;  %1846 = vst [vmem:[#allocation2 + $0x18] sm:$0xff] %v1782_v62  ;;  %v3413_v22 = vmul.f32 -1.442695, %v3291_v15 }
 0x15c   :  { %v1258_v11 = vpop.f32.mrb[35].mxu1  ;;  %v2461_v38 = vpop.eup %2460  ;;  %2480 = vrcp.f32 %v1548_v55  ;;  %v1551_v45 = vadd.f32 1.0, %v2459_v6  ;;  %v1784_v0 = vmul.f32 %v1720_v18, %v1145_v33  ;;  %1847 = vst [vmem:[#allocation2 + $0x20] sm:$0xff] %v1783_v10  ;;  %v1727_v3 = vmul.f32 %v3299_v26, %v3205_v40 }
 0x15d   :  { %v1786_v57 = vmul.f32 %v1722_v21, %v1258_v11  ;;  %v2463_v58 = vpop.eup %2462  ;;  %2482 = vrcp.f32 %v1550_v56  ;;  %v1553_v24 = vadd.f32 1.0, %v2461_v38  ;;  %1849 = vst [vmem:[#allocation2 + $0x30] sm:$0xff] %v1785_v9  ;;  %v3422_v10 = vmul.f32 -1.442695, %v3301_v50  ;;  %v1149_v26 = vpop.f32.mrb[36].mxu0 }
 0x15e   :  { %v2465_v14 = vpop.eup %2464  ;;  %2484 = vrcp.f32 %v1551_v45  ;;  %v1552_v18 = vadd.f32 1.0, %v2463_v58  ;;  %1848 = vst [vmem:[#allocation2 + $0x28] sm:$0xff] %v1784_v0  ;;  %v1728_v37 = vmul.f32 %v3337_v12, %v3210_v43  ;;  %v1730_v40 = vmul.f32 %v3340_v34, %v3212_v44  ;;  %v1262_v46 = vpop.f32.mrb[36].mxu1 }
 0x15f   :  { %1850 = vst [vmem:[#allocation2 + $0x38] sm:$0xff] %v1786_v57  ;;  %v2467_v21 = vpop.eup %2466  ;;  %2486 = vrcp.f32 %v1553_v24  ;;  %v1554_v19 = vadd.f32 1.0, %v2465_v14  ;;  %v1787_v41 = vmul.f32 %v3406_v39, %v1149_v26  ;;  %v1789_v17 = vmul.f32 %v1725_v25, %v1262_v46  ;;  %v1151_v53 = vpop.f32.mrb[37].mxu0  ;;  %v3638_v26 = vld [vmem:[#allocation9_spill] sm:$0xff] }
 0x160   :  { %v2469_v9 = vpop.eup %2468  ;;  %2488 = vrcp.f32 %v1552_v18  ;;  %v1555_v8 = vadd.f32 1.0, %v2467_v21  ;;  %v1264_v5 = vpop.f32.mrb[37].mxu1  ;;  %v1788_v55 = vmul.f32 %v1724_v63, %v1151_v53  ;;  %v2109_v0 = vmul.f32 -1.442695, %v3303_v52  ;;  %v3635_v21 = vld [vmem:[#allocation6_spill] sm:$0xff]  ;;  %v3640_v53 = vld [vmem:[#allocation11_spill] sm:$0xff] }
 0x161   :  { %v2471_v49 = vpop.eup %2470  ;;  %2490 = vrcp.f32 %v1554_v19  ;;  %v1557_v51 = vadd.f32 1.0, %v2469_v9  ;;  %v1790_v43 = vmul.f32 %v1726_v48, %v1264_v5  ;;  %v1153_v12 = vpop.f32.mrb[38].mxu0  ;;  %1851 = vst [vmem:[#allocation2 + $0x40] sm:$0xff] %v1787_v41  ;;  %1853 = vst [vmem:[#allocation2 + $0x50] sm:$0xff] %v1789_v17  ;;  %v2108_v57 = vmul.f32 -1.442695, %v3305_v16 }
 0x162   :  { %v2473_v60 = vpop.eup %2472  ;;  %2492 = vrcp.f32 %v1555_v8  ;;  %v1556_v27 = vadd.f32 1.0, %v2471_v49  ;;  %v1266_v28 = vpop.f32.mrb[38].mxu1  ;;  %v1791_v62 = vmul.f32 %v1727_v3, %v1153_v12  ;;  %1852 = vst [vmem:[#allocation2 + $0x48] sm:$0xff] %v1788_v55  ;;  %v2110_v24 = vmul.f32 -1.442695, %v3307_v4  ;;  %v3634_v3 = vld [vmem:[#allocation5_spill] sm:$0xff] }
 0x163   :  { %v2475_v44 = vpop.eup %2474  ;;  %2494 = vrcp.f32 %v1557_v51  ;;  %v1558_v34 = vadd.f32 1.0, %v2473_v60  ;;  %v1793_v32 = vmul.f32 %v1729_v36, %v1266_v28  ;;  %v1155_v6 = vpop.f32.mrb[39].mxu0  ;;  %1854 = vst [vmem:[#allocation2 + $0x58] sm:$0xff] %v1790_v43  ;;  %v2111_v14 = vmul.f32 -1.442695, %v3309_v7  ;;  %v3636_v19 = vld [vmem:[#allocation7_spill] sm:$0xff] }
 0x164   :  { %v1268_v56 = vpop.f32.mrb[39].mxu1  ;;  %v2477_v39 = vpop.eup %2476  ;;  %2496 = vrcp.f32 %v1556_v27  ;;  %v1559_v25 = vadd.f32 1.0, %v2475_v44  ;;  %v1792_v33 = vmul.f32 %v1728_v37, %v1155_v6  ;;  %1855 = vst [vmem:[#allocation2 + $0x60] sm:$0xff] %v1791_v62  ;;  %v1731_v18 = vmul.f32 %v3343_v42, %v3634_v3  ;;  %v3639_v49 = vld [vmem:[#allocation10_spill] sm:$0xff]  ;;  %v3641_v55 = vld [vmem:[#allocation12_spill] sm:$0xff] }
 0x165   :  { %v1794_v11 = vmul.f32 %v1730_v40, %v1268_v56  ;;  %v2479_v38 = vpop.eup %2478  ;;  %2498 = vrcp.f32 %v1558_v34  ;;  %v1561_v45 = vadd.f32 1.0, %v2477_v39  ;;  %1857 = vst [vmem:[#allocation2 + $0x70] sm:$0xff] %v1793_v32  ;;  %v1733_v36 = vmul.f32 %v3346_v47, %v3635_v21  ;;  %v3637_v40 = vld [vmem:[#allocation8_spill] sm:$0xff]  ;;  %v1159_v41 = vpop.f32.mrb[40].mxu0  ;;  %v3642_v34 = vld [vmem:[#allocation26_spill] sm:$0xff]  ;;  %v3643_v39 = vld [vmem:[#allocation27_spill] sm:$0xff] }
 0x166   :  { %v3431_v58 = vpop.eup %2480  ;;  %2500 = vrcp.f32 %v1559_v25  ;;  %v1560_v63 = vadd.f32 1.0, %v2479_v38  ;;  %1856 = vst [vmem:[#allocation2 + $0x68] sm:$0xff] %v1792_v33  ;;  %v1732_v9 = vmul.f32 %v3353_v30, %v3636_v19  ;;  %v1734_v8 = vmul.f32 %v3360_v54, %v3637_v40  ;;  %v1272_v42 = vpop.f32.mrb[40].mxu1  ;;  %v3647_v19 = vld [vmem:[#allocation13_spill] sm:$0xff] }
 0x167   :  { %1858 = vst [vmem:[#allocation2 + $0x78] sm:$0xff] %v1794_v11  ;;  %v2483_v48 = vpop.eup %2482  ;;  %2502 = vrcp.f32 %v1561_v45  ;;  %v1735_v46 = vmul.f32 %v3367_v23, %v3638_v26  ;;  %v1737_v51 = vmul.f32 %v3374_v35, %v3639_v49  ;;  %v1736_v47 = vmul.f32 %v3377_v29, %v3640_v53  ;;  %v1161_v60 = vpop.f32.mrb[41].mxu0  ;;  %v3644_v11 = vld [vmem:[#allocation28_spill] sm:$0xff]  ;;  %v3649_v26 = vld [vmem:[#allocation15_spill] sm:$0xff] }
 0x168   :  { %v2485_v37 = vpop.eup %2484  ;;  %2504 = vrcp.f32 %v1560_v63  ;;  %v1795_v30 = vmul.f32 %v1731_v18, %v1159_v41  ;;  %v1797_v5 = vmul.f32 %v1733_v36, %v1272_v42  ;;  %v1274_v27 = vpop.f32.mrb[41].mxu1  ;;  %v1738_v23 = vmul.f32 %v3384_v1, %v3641_v55  ;;  %v3645_v63 = vld [vmem:[#allocation29_spill] sm:$0xff]  ;;  %v3646_v18 = vld [vmem:[#allocation30_spill] sm:$0xff]  ;;  %v3650_v49 = vld [vmem:[#allocation16_spill] sm:$0xff] }
 0x169   :  { %v2487_v17 = vpop.eup %2486  ;;  %2506 = vpow2.f32 %v3413_v22  ;;  %v1796_v35 = vmul.f32 %v1732_v9, %v1161_v60  ;;  %v1798_v43 = vmul.f32 %v1734_v8, %v1274_v27  ;;  %v1163_v12 = vpop.f32.mrb[42].mxu0  ;;  %v2113_v29 = vmul.f32 -1.442695, %v3642_v34  ;;  %v3648_v9 = vld [vmem:[#allocation14_spill] sm:$0xff]  ;;  %v3651_v41 = vld [vmem:[#allocation17_spill] sm:$0xff] }
 0x16a   :  { %v2489_v54 = vpop.eup %2488  ;;  %2508 = vpow2.f32 %v3422_v10  ;;  %v1276_v28 = vpop.f32.mrb[42].mxu1  ;;  %1859 = vst [vmem:[#allocation2 + $0x80] sm:$0xff] %v1795_v30  ;;  %1861 = vst [vmem:[#allocation2 + $0x90] sm:$0xff] %v1797_v5  ;;  %v1799_v22 = vmul.f32 %v1735_v46, %v1163_v12  ;;  %v2112_v1 = vmul.f32 -1.442695, %v3643_v39  ;;  %v1741_v40 = vmul.f32 %v3398_v31, %v3648_v9  ;;  %v3652_v5 = vld [vmem:[#allocation18_spill] sm:$0xff] }
 0x16b   :  { %v2491_v44 = vpop.eup %2490  ;;  %2510 = vpow2.f32 %v2109_v0  ;;  %v1801_v62 = vmul.f32 %v1737_v51, %v1276_v28  ;;  %v1165_v32 = vpop.f32.mrb[43].mxu0  ;;  %1860 = vst [vmem:[#allocation2 + $0x88] sm:$0xff] %v1796_v35  ;;  %1862 = vst [vmem:[#allocation2 + $0x98] sm:$0xff] %v1798_v43  ;;  %v2114_v38 = vmul.f32 -1.442695, %v3644_v11  ;;  %v1740_v8 = vmul.f32 %v3431_v58, %v3235_v13  ;;  %v3653_v58 = vld [vmem:[#allocation19_spill] sm:$0xff] }
 0x16c   :  { %v1278_v6 = vpop.f32.mrb[43].mxu1  ;;  %v2493_v56 = vpop.eup %2492  ;;  %2512 = vpow2.f32 %v2108_v57  ;;  %v1800_v10 = vmul.f32 %v1736_v47, %v1165_v32  ;;  %v2115_v45 = vmul.f32 -1.442695, %v3317_v20  ;;  %1863 = vst [vmem:[#allocation2 + $0xa0] sm:$0xff] %v1799_v22  ;;  %v2117_v3 = vmul.f32 -1.442695, %v3645_v63 }
 0x16d   :  { %v1802_v25 = vmul.f32 %v1738_v23, %v1278_v6  ;;  %v2495_v33 = vpop.eup %2494  ;;  %2514 = vpow2.f32 %v2110_v24  ;;  %1865 = vst [vmem:[#allocation2 + $0xb0] sm:$0xff] %v1801_v62  ;;  %v2116_v57 = vmul.f32 -1.442695, %v3646_v18  ;;  %v2118_v21 = vmul.f32 -1.442695, %v3323_v61  ;;  %v1169_v53 = vpop.f32.mrb[44].mxu0 }
 0x16e   :  { %v2497_v0 = vpop.eup %2496  ;;  %2516 = vpow2.f32 %v2111_v14  ;;  %1864 = vst [vmem:[#allocation2 + $0xa8] sm:$0xff] %v1800_v10  ;;  %v1739_v24 = vmul.f32 %v3391_v2, %v3647_v19  ;;  %v1742_v46 = vmul.f32 %v2483_v48, %v3649_v26  ;;  %v1743_v51 = vmul.f32 %v2485_v37, %v3650_v49  ;;  %v1282_v47 = vpop.f32.mrb[44].mxu1  ;;  %v3656_v9 = vld [vmem:[#allocation22_spill] sm:$0xff] }
 0x16f   :  { %1866 = vst [vmem:[#allocation2 + $0xb8] sm:$0xff] %v1802_v25  ;;  %v2499_v36 = vpop.eup %2498  ;;  %2518 = vpow2.f32 %v2113_v29  ;;  %v1745_v42 = vmul.f32 %v2487_v17, %v3651_v41  ;;  %v1744_v2 = vmul.f32 %v2489_v54, %v3652_v5  ;;  %v1805_v31 = vmul.f32 %v1741_v40, %v1282_v47  ;;  %v1171_v27 = vpop.f32.mrb[45].mxu0 }
 0x170   :  { %v2501_v14 = vpop.eup %2500  ;;  %2520 = vpow2.f32 %v2112_v1  ;;  %v1803_v60 = vmul.f32 %v1739_v24, %v1169_v53  ;;  %v1284_v55 = vpop.f32.mrb[45].mxu1  ;;  %v1746_v23 = vmul.f32 %v2491_v44, %v3653_v58  ;;  %v1804_v48 = vmul.f32 %v1740_v8, %v1171_v27  ;;  %v3654_v1 = vld [vmem:[#allocation20_spill] sm:$0xff]  ;;  %v3657_v8 = vld [vmem:[#allocation23_spill] sm:$0xff] }
 0x171   :  { %v2503_v30 = vpop.eup %2502  ;;  %2522 = vpow2.f32 %v2114_v38  ;;  %v1806_v35 = vmul.f32 %v1742_v46, %v1284_v55  ;;  %v1173_v37 = vpop.f32.mrb[46].mxu0  ;;  %1869 = vst [vmem:[#allocation2 + $0xd0] sm:$0xff] %v1805_v31  ;;  %v1747_v10 = vmul.f32 %v2493_v56, %v3654_v1  ;;  %v1750_v40 = vmul.f32 %v2499_v36, %v3656_v9 }
 0x172   :  { %v2505_v13 = vpop.eup %2504  ;;  %2524 = vpow2.f32 %v2115_v45  ;;  %v1286_v43 = vpop.f32.mrb[46].mxu1  ;;  %1867 = vst [vmem:[#allocation2 + $0xc0] sm:$0xff] %v1803_v60  ;;  %v1807_v12 = vmul.f32 %v1743_v51, %v1173_v37  ;;  %1868 = vst [vmem:[#allocation2 + $0xc8] sm:$0xff] %v1804_v48  ;;  %v1749_v45 = vmul.f32 %v2495_v33, %v3270_v59  ;;  %v1751_v26 = vmul.f32 %v2501_v14, %v3657_v8  ;;  %v3659_v51 = vld [vmem:[#allocation25_spill] sm:$0xff] }
 0x173   :  { %v2507_v17 = vpop.eup %2506  ;;  %2526 = vpow2.f32 %v2117_v3  ;;  %v1809_v28 = vmul.f32 %v1745_v42, %v1286_v43  ;;  %v1175_v54 = vpop.f32.mrb[47].mxu0  ;;  %1870 = vst [vmem:[#allocation2 + $0xd8] sm:$0xff] %v1806_v35  ;;  %v3655_v3 = vld [vmem:[#allocation21_spill] sm:$0xff]  ;;  %v1752_v41 = vmul.f32 %v2505_v13, %v3659_v51 }
 0x174   :  { %v1288_v29 = vpop.f32.mrb[47].mxu1  ;;  %v2509_v22 = vpop.eup %2508  ;;  %v1562_v62 = vadd.f32 1.0, %v2507_v17  ;;  %2528 = vpow2.f32 %v2116_v57  ;;  %v1808_v32 = vmul.f32 %v1744_v2, %v1175_v54  ;;  %1871 = vst [vmem:[#allocation2 + $0xe0] sm:$0xff] %v1807_v12  ;;  %v1748_v19 = vmul.f32 %v2497_v0, %v3655_v3 }
 0x175   :  { %v1810_v44 = vmul.f32 %v1746_v23, %v1288_v29  ;;  %v2511_v6 = vpop.eup %2510  ;;  %v1563_v25 = vadd.f32 1.0, %v2509_v22  ;;  %2530 = vpow2.f32 %v2118_v21  ;;  %1873 = vst [vmem:[#allocation2 + $0xf0] sm:$0xff] %v1809_v28  ;;  %v3658_v21 = vld [vmem:[#allocation24_spill] sm:$0xff]  ;;  %v1179_v33 = vpop.f32.mrb[48].mxu0 }
 0x176   :  { %v2513_v38 = vpop.eup %2512  ;;  %2532 = vrcp.f32 %v1562_v62  ;;  %v1565_v24 = vadd.f32 1.0, %v2511_v6  ;;  %1872 = vst [vmem:[#allocation2 + $0xe8] sm:$0xff] %v1808_v32  ;;  %v1753_v49 = vmul.f32 %v2503_v30, %v3658_v21  ;;  %v1292_v0 = vpop.f32.mrb[48].mxu1  ;;  %v1811_v47 = vmul.f32 %v1747_v10, %v1179_v33  ;;  %v3664_v33 = vld [vmem:[#allocation35_spill] sm:$0xff] }
 0x177   :  { %1874 = vst [vmem:[#allocation2 + $0xf8] sm:$0xff] %v1810_v44  ;;  %v2515_v57 = vpop.eup %2514  ;;  %2534 = vrcp.f32 %v1563_v25  ;;  %v1564_v56 = vadd.f32 1.0, %v2513_v38  ;;  %v1813_v5 = vmul.f32 %v1749_v45, %v1292_v0  ;;  %v1181_v2 = vpop.f32.mrb[49].mxu0  ;;  %v3660_v44 = vld [vmem:[#allocation31_spill] sm:$0xff]  ;;  %v3661_v25 = vld [vmem:[#allocation32_spill] sm:$0xff] }
 0x178   :  { %v2517_v46 = vpop.eup %2516  ;;  %2536 = vrcp.f32 %v1565_v24  ;;  %v1566_v59 = vadd.f32 1.0, %v2515_v57  ;;  %v1294_v36 = vpop.f32.mrb[49].mxu1  ;;  %v1812_v31 = vmul.f32 %v1748_v19, %v1181_v2  ;;  %1875 = vst [vmem:[#allocation2 + $0x100] sm:$0xff] %v1811_v47  ;;  %v2119_v6 = vmul.f32 -1.442695, %v3660_v44  ;;  %v3662_v57 = vld [vmem:[#allocation33_spill] sm:$0xff] }
 0x179   :  { %v2519_v42 = vpop.eup %2518  ;;  %2538 = vrcp.f32 %v1564_v56  ;;  %v1567_v53 = vadd.f32 1.0, %v2517_v46  ;;  %v1814_v27 = vmul.f32 %v1750_v40, %v1294_v36  ;;  %v1183_v55 = vpop.f32.mrb[50].mxu0  ;;  %1877 = vst [vmem:[#allocation2 + $0x110] sm:$0xff] %v1813_v5  ;;  %v2121_v38 = vmul.f32 -1.442695, %v3661_v25  ;;  %v3663_v46 = vld [vmem:[#allocation34_spill] sm:$0xff] }
 0x17a   :  { %v2521_v60 = vpop.eup %2520  ;;  %2540 = vrcp.f32 %v1566_v59  ;;  %v1569_v14 = vadd.f32 1.0, %v2519_v42  ;;  %v1296_v30 = vpop.f32.mrb[50].mxu1  ;;  %v1815_v23 = vmul.f32 %v1751_v26, %v1183_v55  ;;  %1876 = vst [vmem:[#allocation2 + $0x108] sm:$0xff] %v1812_v31  ;;  %v2120_v9 = vmul.f32 -1.442695, %v3662_v57  ;;  %v3665_v2 = vld [vmem:[#allocation36_spill] sm:$0xff] }
 0x17b   :  { %v2523_v58 = vpop.eup %2522  ;;  %2542 = vrcp.f32 %v1567_v53  ;;  %v1568_v13 = vadd.f32 1.0, %v2521_v60  ;;  %v1817_v48 = vmul.f32 %v1753_v49, %v1296_v30  ;;  %v1185_v35 = vpop.f32.mrb[51].mxu0  ;;  %1878 = vst [vmem:[#allocation2 + $0x118] sm:$0xff] %v1814_v27  ;;  %v2122_v21 = vmul.f32 -1.442695, %v3663_v46  ;;  %v3666_v31 = vld [vmem:[#allocation37_spill] sm:$0xff] }
 0x17c   :  { %v1298_v37 = vpop.f32.mrb[51].mxu1  ;;  %v2525_v43 = vpop.eup %2524  ;;  %2544 = vrcp.f32 %v1569_v14  ;;  %v1570_v17 = vadd.f32 1.0, %v2523_v58  ;;  %v1816_v12 = vmul.f32 %v1752_v41, %v1185_v35  ;;  %1879 = vst [vmem:[#allocation2 + $0x120] sm:$0xff] %v1815_v23  ;;  %v2123_v0 = vmul.f32 -1.442695, %v3664_v33  ;;  %v3667_v58 = vld [vmem:[#allocation38_spill] sm:$0xff] }
 0x17d   :  { %v2527_v28 = vpop.eup %2526  ;;  %2546 = vrcp.f32 %v1568_v13  ;;  %v1571_v54 = vadd.f32 1.0, %v2525_v43  ;;  %1881 = vst [vmem:[#allocation2 + $0x130] sm:$0xff] %v1817_v48  ;;  %v1189_v45 = vpop.f32.mrb[52].mxu0  ;;  %v2124_v27 = vmul.f32 -1.442695, %v3666_v31  ;;  %v3668_v35 = vld [vmem:[#allocation39_spill] sm:$0xff] }
 0x17e   :  { %v2529_v29 = vpop.eup %2528  ;;  %2548 = vrcp.f32 %v1570_v17  ;;  %v1573_v22 = vadd.f32 1.0, %v2527_v28  ;;  %1880 = vst [vmem:[#allocation2 + $0x128] sm:$0xff] %v1816_v12  ;;  %v1302_v3 = vpop.f32.mrb[52].mxu1  ;;  %v2126_v13 = vmul.f32 -1.442695, %v3667_v58  ;;  %v3669_v12 = vld [vmem:[#allocation40_spill] sm:$0xff] }
 0x17f   :  { %v2531_v62 = vpop.eup %2530  ;;  %2550 = vrcp.f32 %v1571_v54  ;;  %v1572_v32 = vadd.f32 1.0, %v2529_v29  ;;  %v1191_v40 = vpop.f32.mrb[53].mxu0  ;;  %v2129_v28 = vmul.f32 -1.442695, %v3669_v12 }
 0x180   :  { %v2533_v1 = vpop.eup %2532  ;;  %2552 = vrcp.f32 %v1573_v22  ;;  %v1574_v10 = vadd.f32 1.0, %v2531_v62  ;;  %v1304_v8 = vpop.f32.mrb[53].mxu1 }
 0x181   :  { %v2535_v19 = vpop.eup %2534  ;;  %v1754_v24 = vmul.f32 %v2533_v1, %v3291_v15  ;;  %2554 = vrcp.f32 %v1572_v32  ;;  %v1193_v49 = vpop.f32.mrb[54].mxu0 }
 0x182   :  { %v2537_v26 = vpop.eup %2536  ;;  %v1755_v56 = vmul.f32 %v2535_v19, %v3301_v50  ;;  %2556 = vrcp.f32 %v1574_v10  ;;  %v1306_v51 = vpop.f32.mrb[54].mxu1  ;;  %v2125_v50 = vmul.f32 -1.442695, %v3665_v2 }
 0x183   :  { %v2539_v41 = vpop.eup %2538  ;;  %v1757_v59 = vmul.f32 %v2537_v26, %v3303_v52  ;;  %2558 = vpow2.f32 %v2119_v6  ;;  %v1818_v15 = vmul.f32 %v1754_v24, %v1298_v37  ;;  %v1195_v42 = vpop.f32.mrb[55].mxu0  ;;  %v2127_v37 = vmul.f32 -1.442695, %v3668_v35 }
 0x184   :  { %v1308_v53 = vpop.f32.mrb[55].mxu1  ;;  %v2541_v47 = vpop.eup %2540  ;;  %v1756_v5 = vmul.f32 %v2539_v41, %v3305_v16  ;;  %2560 = vpow2.f32 %v2121_v38  ;;  %v1819_v36 = vmul.f32 %v1755_v56, %v1189_v45  ;;  %v3671_v45 = vld [vmem:[#allocation42_spill] sm:$0xff] }
 0x185   :  { %v2543_v60 = vpop.eup %2542  ;;  %v1758_v14 = vmul.f32 %v2541_v47, %v3307_v4  ;;  %2562 = vpow2.f32 %v2120_v9  ;;  %1882 = vst [vmem:[#allocation2 + $0x138] sm:$0xff] %v1818_v15  ;;  %v1821_v52 = vmul.f32 %v1757_v59, %v1302_v3  ;;  %v1199_v54 = vpop.f32.mrb[56].mxu0  ;;  %v2130_v3 = vmul.f32 -1.442695, %v3671_v45 }
 0x186   :  { %v2545_v55 = vpop.eup %2544  ;;  %v1759_v30 = vmul.f32 %v2543_v60, %v3309_v7  ;;  %2564 = vpow2.f32 %v2122_v21  ;;  %1883 = vst [vmem:[#allocation2 + $0x140] sm:$0xff] %v1819_v36  ;;  %v1820_v16 = vmul.f32 %v1756_v5, %v1191_v40  ;;  %v1312_v29 = vpop.f32.mrb[56].mxu1 }
 0x187   :  { %v2547_v23 = vpop.eup %2546  ;;  %v1761_v48 = vmul.f32 %v2545_v55, %v3642_v34  ;;  %2566 = vpow2.f32 %v2123_v0  ;;  %1885 = vst [vmem:[#allocation2 + $0x150] sm:$0xff] %v1821_v52  ;;  %v1822_v4 = vmul.f32 %v1758_v14, %v1304_v8  ;;  %v3670_v34 = vld [vmem:[#allocation41_spill] sm:$0xff]  ;;  %v1201_v1 = vpop.f32.mrb[57].mxu0 }
 0x188   :  { %v2549_v43 = vpop.eup %2548  ;;  %v1760_v17 = vmul.f32 %v2547_v23, %v3643_v39  ;;  %2568 = vpow2.f32 %v2125_v50  ;;  %1884 = vst [vmem:[#allocation2 + $0x148] sm:$0xff] %v1820_v16  ;;  %v1823_v7 = vmul.f32 %v1759_v30, %v1193_v49  ;;  %v2128_v32 = vmul.f32 -1.442695, %v3670_v34  ;;  %v1314_v10 = vpop.f32.mrb[57].mxu1 }
 0x189   :  { %v2551_v22 = vpop.eup %2550  ;;  %v1762_v62 = vmul.f32 %v2549_v43, %v3644_v11  ;;  %2570 = vpow2.f32 %v2124_v27  ;;  %1886 = vst [vmem:[#allocation2 + $0x158] sm:$0xff] %v1822_v4  ;;  %v1825_v6 = vmul.f32 %v1761_v48, %v1306_v51  ;;  %v3500_v24 = vpop.f32.mrb[58].mxu0 }
 0x18a   :  { %v2553_v38 = vpop.eup %2552  ;;  %v1763_v39 = vmul.f32 %v2551_v22, %v3317_v20  ;;  %2572 = vpow2.f32 %v2126_v13  ;;  %1887 = vst [vmem:[#allocation2 + $0x160] sm:$0xff] %v1823_v7  ;;  %v1824_v19 = vmul.f32 %v1760_v17, %v1195_v42  ;;  %v3502_v9 = vpop.f32.mrb[58].mxu1 }
 0x18b   :  { %v2555_v11 = vpop.eup %2554  ;;  %v1765_v40 = vmul.f32 %v2553_v38, %v3645_v63  ;;  %2574 = vpow2.f32 %v2127_v37  ;;  %1889 = vst [vmem:[#allocation2 + $0x170] sm:$0xff] %v1825_v6  ;;  %v1826_v8 = vmul.f32 %v1762_v62, %v1308_v53  ;;  %v3505_v26 = vpop.f32.mrb[59].mxu0 }
 0x18c   :  { %v3507_v56 = vpop.f32.mrb[59].mxu1  ;;  %v2557_v20 = vpop.eup %2556  ;;  %v1764_v21 = vmul.f32 %v2555_v11, %v3646_v18  ;;  %2576 = vpow2.f32 %v2129_v28  ;;  %1888 = vst [vmem:[#allocation2 + $0x168] sm:$0xff] %v1824_v19  ;;  %v1827_v49 = vmul.f32 %v1763_v39, %v1199_v54 }
 0x18d   :  { %v2559_v51 = vpop.eup %2558  ;;  %v1766_v41 = vmul.f32 %v2557_v20, %v3323_v61  ;;  %2578 = vpow2.f32 %v2128_v32  ;;  %1890 = vst [vmem:[#allocation2 + $0x178] sm:$0xff] %v1826_v8  ;;  %v1829_v59 = vmul.f32 %v1765_v40, %v1312_v29  ;;  %v1209_v50 = vpop.f32.mrb[60].mxu0 }
 0x18e   :  { %v2561_v63 = vpop.eup %2560  ;;  %v1575_v0 = vadd.f32 1.0, %v2559_v51  ;;  %2580 = vpow2.f32 %v2130_v3  ;;  %1891 = vst [vmem:[#allocation2 + $0x180] sm:$0xff] %v1827_v49  ;;  %v1828_v15 = vmul.f32 %v1764_v21, %v1201_v1  ;;  %v1322_v36 = vpop.f32.mrb[60].mxu1 }
 0x18f   :  { %v2563_v42 = vpop.eup %2562  ;;  %v1577_v53 = vadd.f32 1.0, %v2561_v63  ;;  %1893 = vst [vmem:[#allocation2 + $0x190] sm:$0xff] %v1829_v59  ;;  %v1830_v47 = vmul.f32 %v1766_v41, %v1314_v10  ;;  %v1211_v14 = vpop.f32.mrb[61].mxu0 }
 0x190   :  { %v2565_v5 = vpop.eup %2564  ;;  %2582 = vrcp.f32 %v1575_v0  ;;  %v1576_v18 = vadd.f32 1.0, %v2563_v42  ;;  %1892 = vst [vmem:[#allocation2 + $0x188] sm:$0xff] %v1828_v15  ;;  %v3511_v27 = vpop.f32.mrb[61].mxu1 }
 0x191   :  { %v2567_v60 = vpop.eup %2566  ;;  %2584 = vrcp.f32 %v1577_v53  ;;  %v1578_v61 = vadd.f32 1.0, %v2565_v5  ;;  %1894 = vst [vmem:[#allocation2 + $0x198] sm:$0xff] %v1830_v47  ;;  %v3513_v30 = vpop.f32.mrb[62].mxu0 }
 0x192   :  { %v2569_v52 = vpop.eup %2568  ;;  %2586 = vrcp.f32 %v1576_v18  ;;  %v1579_v55 = vadd.f32 1.0, %v2567_v60  ;;  %v3515_v13 = vpop.f32.mrb[62].mxu1 }
 0x193   :  { %v2571_v16 = vpop.eup %2570  ;;  %2588 = vrcp.f32 %v1578_v61  ;;  %v1581_v23 = vadd.f32 1.0, %v2569_v52  ;;  %v3517_v48 = vpop.f32.mrb[63].mxu0 }
 0x194   :  { %v3519_v37 = vpop.f32.mrb[63].mxu1  ;;  %v2573_v4 = vpop.eup %2572  ;;  %2590 = vrcp.f32 %v1579_v55  ;;  %v1580_v43 = vadd.f32 1.0, %v2571_v16 }
 0x195   :  { %v2575_v17 = vpop.eup %2574  ;;  %2592 = vrcp.f32 %v1581_v23  ;;  %v1582_v28 = vadd.f32 1.0, %v2573_v4 }
 0x196   :  { %v2577_v7 = vpop.eup %2576  ;;  %2594 = vrcp.f32 %v1580_v43  ;;  %v1583_v54 = vadd.f32 1.0, %v2575_v17 }
 0x197   :  { %v2579_v29 = vpop.eup %2578  ;;  %2596 = vrcp.f32 %v1582_v28  ;;  %v1585_v22 = vadd.f32 1.0, %v2577_v7 }
 0x198   :  { %v2581_v62 = vpop.eup %2580  ;;  %2598 = vrcp.f32 %v1583_v54  ;;  %v1584_v32 = vadd.f32 1.0, %v2579_v29 }
 0x199   :  { %2600 = vrcp.f32 %v1585_v22  ;;  %v1586_v6 = vadd.f32 1.0, %v2581_v62 }
 0x19a   :  { %v2583_v1 = vpop.eup %2582  ;;  %2602 = vrcp.f32 %v1584_v32 }
 0x19b   :  { %v2585_v10 = vpop.eup %2584  ;;  %v1767_v38 = vmul.f32 %v2583_v1, %v3660_v44  ;;  %2604 = vrcp.f32 %v1586_v6 }
 0x19c   :  { %v2587_v39 = vpop.eup %2586  ;;  %v1769_v3 = vmul.f32 %v2585_v10, %v3661_v25 }
 0x19d   :  { %v2589_v19 = vpop.eup %2588  ;;  %v1768_v11 = vmul.f32 %v2587_v39, %v3662_v57  ;;  %v1831_v40 = vmul.f32 %v1767_v38, %v3500_v24 }
 0x19e   :  { %v2591_v8 = vpop.eup %2590  ;;  %v1770_v20 = vmul.f32 %v2589_v19, %v3663_v46  ;;  %v1833_v21 = vmul.f32 %v1769_v3, %v3502_v9 }
 0x19f   :  { %v2593_v49 = vpop.eup %2592  ;;  %v1771_v51 = vmul.f32 %v2591_v8, %v3664_v33  ;;  %1895 = vst [vmem:[#allocation2 + $0x1a0] sm:$0xff] %v1831_v40  ;;  %v1832_v44 = vmul.f32 %v1768_v11, %v3505_v26 }
 0x1a0   :  { %v2595_v41 = vpop.eup %2594  ;;  %v1773_v59 = vmul.f32 %v2593_v49, %v3665_v2  ;;  %1897 = vst [vmem:[#allocation2 + $0x1b0] sm:$0xff] %v1833_v21  ;;  %v1834_v25 = vmul.f32 %v1770_v20, %v3507_v56 }
 0x1a1   :  { %v2597_v57 = vpop.eup %2596  ;;  %v1772_v24 = vmul.f32 %v2595_v41, %v3666_v31  ;;  %1896 = vst [vmem:[#allocation2 + $0x1a8] sm:$0xff] %v1832_v44  ;;  %v1835_v63 = vmul.f32 %v1771_v51, %v1209_v50 }
 0x1a2   :  { %v2599_v46 = vpop.eup %2598  ;;  %v1774_v9 = vmul.f32 %v2597_v57, %v3667_v58  ;;  %1898 = vst [vmem:[#allocation2 + $0x1b8] sm:$0xff] %v1834_v25  ;;  %v1837_v0 = vmul.f32 %v1773_v59, %v1322_v36 }
 0x1a3   :  { %v2601_v33 = vpop.eup %2600  ;;  %v1775_v15 = vmul.f32 %v2599_v46, %v3668_v35  ;;  %1899 = vst [vmem:[#allocation2 + $0x1c0] sm:$0xff] %v1835_v63  ;;  %v1836_v26 = vmul.f32 %v1772_v24, %v1211_v14 }
 0x1a4   :  { %v2603_v42 = vpop.eup %2602  ;;  %v1777_v2 = vmul.f32 %v2601_v33, %v3669_v12  ;;  %1901 = vst [vmem:[#allocation2 + $0x1d0] sm:$0xff] %v1837_v0  ;;  %v1838_v56 = vmul.f32 %v1774_v9, %v3511_v27 }
 0x1a5   :  { %v2605_v31 = vpop.eup %2604  ;;  %v1776_v53 = vmul.f32 %v2603_v42, %v3670_v34  ;;  %1900 = vst [vmem:[#allocation2 + $0x1c8] sm:$0xff] %v1836_v26  ;;  %v1839_v58 = vmul.f32 %v1775_v15, %v3513_v30 }
 0x1a6   :  { %v1778_v47 = vmul.f32 %v2605_v31, %v3671_v45  ;;  %1902 = vst [vmem:[#allocation2 + $0x1d8] sm:$0xff] %v1838_v56  ;;  %v1841_v35 = vmul.f32 %v1777_v2, %v3515_v13 }
 0x1a7   :  { %1903 = vst [vmem:[#allocation2 + $0x1e0] sm:$0xff] %v1839_v58  ;;  %v1840_v5 = vmul.f32 %v1776_v53, %v3517_v48 }
 0x1a8   :  { %1905 = vst [vmem:[#allocation2 + $0x1f0] sm:$0xff] %v1841_v35  ;;  %v1842_v12 = vmul.f32 %v1778_v47, %v3519_v37 }
 0x1a9   :  { %1904 = vst [vmem:[#allocation2 + $0x1e8] sm:$0xff] %v1840_v5 }
 0x1aa   :  { %1906 = vst [vmem:[#allocation2 + $0x1f8] sm:$0xff] %v1842_v12 }
 0x1ab   :  { %2617 = shalt.err (!%p2614_p4)
}
 0x1ac   :  { %s2618_s27 = scalar_lea.hbm %s3557_s3, 8192 }
 0x1ad   :  { %p2619_p5 = scmp.ne.s32.totalorder %s3557_s3, %s2618_s27  ;;  %p2622_p6 = scmp.lt.u32.totalorder %s2618_s27, %s3557_s3 }
 0x1af   :  { %p2624_p7 = pnand %p2622_p6, %p2619_p5 }
 0x1b1   :  { %2627 = shalt.err (!%p2624_p7)
}
 0x1b2   :  { %s2631_s5 = smov 512   ;;  %s2632_s6 = smov 32  }
 0x1b3   :  { %1918 = dma.vmem_to_hbm [thread:$0]  %s1913_s23, 8192, %s3557_s3, [#allocation3], %s2631_s5, %s2631_s5, %s2632_s6  }
 0x1b4   :  { %2628 = dma.done.wait [#allocation3], 8192  }
 0x1b5   :  { %2629 = vsyncadd [#allocation3], 4294959104 }
 0x1b6   :  { %1922 = vsyncpa [#allocation3], 1 }

</bundles_post_ra>
